<compile_context>
chip_gen: v6e
topology: v6e:2x2x1
jax: 0.10.0
libtpu: 0.0.40
codegen_flags: <defaults>
</compile_context>

<pallas_src>
import functools

import jax
import jax.numpy as jnp
from jax.experimental import pallas as pl
from jax.experimental.pallas import tpu as pltpu


def _focal_loss_kernel(logits_ref, label_ref, out_ref, *, gamma, scale):
    # logits_ref: (tm, C) input dtype, label_ref: (tm, 1) int32, out_ref: (1, tm) f32
    lab = label_ref[...]                                          # (tm, 1) int32
    x = logits_ref[...].astype(jnp.float32)                       # (tm, C) f32

    # ---- numerically-stable log-softmax pieces (no full log-prob tensor) ----
    m = jnp.max(x, axis=-1, keepdims=True)                        # (tm, 1)
    z = x - m                                                     # (tm, C); x dead here
    lse = jnp.log(jnp.sum(jnp.exp(z), axis=-1, keepdims=True))    # (tm, 1)

    # ---- fused target gather: masked select on the shifted logits ----
    cls_idx = jax.lax.broadcasted_iota(jnp.int32, z.shape, 1)     # (tm, C)
    zt = jnp.sum(jnp.where(cls_idx == lab, z, 0.0),
                 axis=-1, keepdims=True)                          # (tm, 1)
    logpt = zt - lse                                              # (tm, 1)
    # logpt == -cross_entropy(cls_score, label, reduction='none')
    # TODO(synk): no ignore_index / out-of-range-label handling (matches the
    # reference module only for valid in-range labels).

    # ---- focal transform ----
    pt = jnp.exp(logpt)
    one_minus_pt = jnp.maximum(1.0 - pt, 0.0)                     # guard pt > 1
    if float(gamma) == float(int(gamma)) and int(gamma) >= 0:
        w = jnp.ones_like(one_minus_pt)
        for _ in range(int(gamma)):                               # VPU only
            w = w * one_minus_pt
    else:
        w = one_minus_pt ** gamma
    focal = (scale * (-w * logpt)).astype(out_ref.dtype)          # (tm, 1)

    # sublane -> lane repack for a lane-dense, unmasked store (XLU is idle here)
    out_ref[...] = focal.reshape(out_ref.shape)                   # (1, tm)


def _round_up(x, m):
    return (x + m - 1) // m * m


def focal_loss(cls_score, label, *, gamma=2.0, balance_param=0.25,
               loss_weight=1.0, block_rows=None, vmem_limit_bytes=48 << 20):
    """Pallas TPU focal loss (softmax CE variant, reduction='none' semantics)."""
    N, C = cls_score.shape
    itemsize = jnp.dtype(cls_score.dtype).itemsize

    # ---- row-tile sizing against a live-VMEM budget (v7x: 64 MiB physical) ----
    # Everything narrower than 128 lanes is padded to 128 in VMEM, so budget on
    # padded rows: 2x double-buffered input block, ~4 live (tm,C)-shaped f32
    # temporaries, ~4 live (tm,1)-shaped (lane-padded) f32 temporaries.
    if block_rows is None:
        lane_c = max(C, 128)
        bytes_per_row = 2 * lane_c * itemsize + 4 * lane_c * 4 + 4 * 128 * 4
        live_budget = 24 << 20                       # well under 48 MiB scoped
        tm = live_budget // bytes_per_row
        tm = min(tm, 8192)
        tm = max(128, (tm // 128) * 128)
        tm = min(tm, _round_up(N, 128))              # don't exceed (rounded) N
        if N >= 256:                                 # >= 2 tiles -> both v7x TCs
            tm = min(tm, _round_up(pl.cdiv(N, 2), 128))
    else:
        tm = max(128, (block_rows // 128) * 128)     # lane-dense out blocks

    grid = (pl.cdiv(N, tm),)                         # partial trailing block OK

    label2d = label.astype(jnp.int32).reshape(N, 1)  # sublane-major labels

    kernel = functools.partial(
        _focal_loss_kernel,
        gamma=float(gamma),
        scale=float(loss_weight) * float(balance_param),
    )

    cost = pl.CostEstimate(
        flops=5 * N * C,
        transcendentals=N * C + 2 * N,
        bytes_accessed=N * C * itemsize + N * 4 + N * 4,
    )

    out = pl.pallas_call(
        kernel,
        out_shape=jax.ShapeDtypeStruct((1, N), jnp.float32),
        grid=grid,
        in_specs=[
            pl.BlockSpec((tm, C), lambda i: (i, 0)),   # logits tile
            pl.BlockSpec((tm, 1), lambda i: (i, 0)),   # labels tile
        ],
        out_specs=pl.BlockSpec((1, tm), lambda i: (0, i)),  # lane-dense output
        compiler_params=pltpu.CompilerParams(
            dimension_semantics=("parallel",),         # independent row tiles
            vmem_limit_bytes=vmem_limit_bytes,
        ),
        cost_estimate=cost,
    )(cls_score, label2d)

    return out[0]                                      # (N,)


def _focal_loss_ref(cls_score, label, gamma=2.0, balance_param=0.25,
                    loss_weight=1.0):
    """Pure-JAX reference mirroring the PyTorch module."""
    logp = jax.nn.log_softmax(cls_score.astype(jnp.float32), axis=-1)
    logpt = jnp.take_along_axis(logp, label[:, None].astype(jnp.int32), axis=-1)[:, 0]
    pt = jnp.exp(logpt)
    focal = -((1.0 - pt) ** gamma) * logpt
    return loss_weight * balance_param * focal


if __name__ == "__main__":
    key = jax.random.PRNGKey(0)
    k1, k2 = jax.random.split(key)
    N, C = 300, 32
    cls_score = jax.random.normal(k1, (N, C), dtype=jnp.float32)
    label = jax.random.randint(k2, (N,), 0, C, dtype=jnp.int32)
    ref = _focal_loss_ref(cls_score, label)

    # 1) default auto tiling: 2 tiles (tm=256) with a partial trailing block,
    #    no wrapper pad pass over the logits.
    loss = jax.block_until_ready(focal_loss(cls_score, label))
    assert loss.shape == (N,)
    assert jnp.allclose(loss, ref, atol=1e-5, rtol=1e-5), (loss, ref)

    # 2) explicit small tile: 3 grid steps, exercises multi-step pipelining.
    loss2 = jax.block_until_ready(focal_loss(cls_score, label, block_rows=128))
    assert jnp.allclose(loss2, ref, atol=1e-5, rtol=1e-5), (loss2, ref)

    # 3) bf16 logits across the HBM boundary (kernel casts to f32 per tile).
    cls_bf16 = cls_score.astype(jnp.bfloat16)
    ref_bf16 = _focal_loss_ref(cls_bf16.astype(jnp.float32), label)
    loss3 = jax.block_until_ready(focal_loss(cls_bf16, label))
    assert jnp.allclose(loss3, ref_bf16, atol=1e-4, rtol=1e-4), (loss3, ref_bf16)

    # 4) tiny N: single partial tile, lane-masked output write.
    Ns = 27
    loss4 = jax.block_until_ready(focal_loss(cls_score[:Ns], label[:Ns]))
    assert loss4.shape == (Ns,)
    assert jnp.allclose(loss4, ref[:Ns], atol=1e-5, rtol=1e-5), (loss4, ref[:Ns])

    print("KERNEL_OK")
</pallas_src>

<mosaic_0001>
module attributes {stable_mosaic.version = 11 : i64} {
  func.func @_focal_loss_kernel(%arg0: i32, %arg1: memref<256x32xf32, #tpu.memory_space<vmem>>, %arg2: memref<256x1xi32, #tpu.memory_space<vmem>>, %arg3: memref<1x256xf32, #tpu.memory_space<vmem>>) attributes {dimension_semantics = [#tpu.dimension_semantics<parallel>], iteration_bounds = array<i64: 2>, scalar_prefetch = 0 : i64, scratch_operands = 0 : i64, tpu.core_type = #tpu.core_type<tc>, window_params = [{transform_indices = @transform_0, window_bounds = array<i64: 256, 32>}, {transform_indices = @transform_1, window_bounds = array<i64: 256, 1>}, {transform_indices = @transform_2, window_bounds = array<i64: 1, 256>}]} {
    %c0 = arith.constant 0 : index
    %c0_0 = arith.constant 0 : index
    %0 = vector.load %arg2[%c0, %c0_0] : memref<256x1xi32, #tpu.memory_space<vmem>>, vector<256x1xi32>
    %c0_1 = arith.constant 0 : index
    %c0_2 = arith.constant 0 : index
    %1 = vector.load %arg1[%c0_1, %c0_2] : memref<256x32xf32, #tpu.memory_space<vmem>>, vector<256x32xf32>
    %cst = arith.constant dense<0xFF800000> : vector<256xf32>
    %2 = vector.multi_reduction <maximumf>, %1, %cst [1] : vector<256x32xf32> to vector<256xf32>
    %3 = vector.shape_cast %2 : vector<256xf32> to vector<256x1xf32>
    %4 = vector.broadcast %3 : vector<256x1xf32> to vector<256x32xf32>
    %5 = arith.subf %1, %4 : vector<256x32xf32>
    %6 = math.exp %5 : vector<256x32xf32>
    %cst_3 = arith.constant dense<0.000000e+00> : vector<256xf32>
    %7 = vector.multi_reduction <add>, %6, %cst_3 [1] : vector<256x32xf32> to vector<256xf32>
    %8 = vector.shape_cast %7 : vector<256xf32> to vector<256x1xf32>
    %9 = math.log %8 : vector<256x1xf32>
    %10 = tpu.iota {dimensions = array<i32: 1>} : vector<256x32xi32>
    %11 = vector.broadcast %0 : vector<256x1xi32> to vector<256x32xi32>
    %12 = arith.cmpi eq, %10, %11 : vector<256x32xi32>
    %cst_4 = arith.constant 0.000000e+00 : f32
    %13 = vector.broadcast %cst_4 : f32 to vector<256x32xf32>
    %14 = arith.select %12, %5, %13 : vector<256x32xi1>, vector<256x32xf32>
    %cst_5 = arith.constant dense<0.000000e+00> : vector<256xf32>
    %15 = vector.multi_reduction <add>, %14, %cst_5 [1] : vector<256x32xf32> to vector<256xf32>
    %16 = vector.shape_cast %15 : vector<256xf32> to vector<256x1xf32>
    %17 = arith.subf %16, %9 : vector<256x1xf32>
    %18 = math.exp %17 : vector<256x1xf32>
    %cst_6 = arith.constant 1.000000e+00 : f32
    %19 = vector.broadcast %cst_6 : f32 to vector<256x1xf32>
    %20 = arith.subf %19, %18 : vector<256x1xf32>
    %cst_7 = arith.constant 0.000000e+00 : f32
    %21 = vector.broadcast %cst_7 : f32 to vector<256x1xf32>
    %22 = arith.maximumf %20, %21 : vector<256x1xf32>
    %cst_8 = arith.constant 1.000000e+00 : f32
    %23 = vector.broadcast %cst_8 : f32 to vector<256x1xf32>
    %24 = arith.mulf %23, %22 : vector<256x1xf32>
    %25 = arith.mulf %24, %22 : vector<256x1xf32>
    %cst_9 = arith.constant 0.000000e+00 : f32
    %26 = vector.broadcast %cst_9 : f32 to vector<256x1xf32>
    %27 = arith.subf %26, %25 : vector<256x1xf32>
    %28 = arith.mulf %27, %17 : vector<256x1xf32>
    %cst_10 = arith.constant 2.500000e-01 : f32
    %29 = vector.broadcast %cst_10 : f32 to vector<256x1xf32>
    %30 = arith.mulf %29, %28 : vector<256x1xf32>
    %31 = vector.shape_cast %30 : vector<256x1xf32> to vector<1x256xf32>
    %c0_11 = arith.constant 0 : index
    %c0_12 = arith.constant 0 : index
    %32 = vector.load %arg3[%c0_11, %c0_12] : memref<1x256xf32, #tpu.memory_space<vmem>>, vector<1x256xf32>
    tpu.vector_store %arg3[%c0_11, %c0_12], %31 {strides = array<i32>} : memref<1x256xf32, #tpu.memory_space<vmem>>, vector<1x256xf32>,
    return
  }
  func.func @transform_0(%arg0: i32) -> (i32, i32) {
    %c0_i32 = arith.constant 0 : i32
    %c0_i32_0 = arith.constant 0 : i32
    return %arg0, %c0_i32 : i32, i32
  }
  func.func @transform_1(%arg0: i32) -> (i32, i32) {
    %c0_i32 = arith.constant 0 : i32
    %c0_i32_0 = arith.constant 0 : i32
    return %arg0, %c0_i32 : i32, i32
  }
  func.func @transform_2(%arg0: i32) -> (i32, i32) {
    %c0_i32 = arith.constant 0 : i32
    %c0_i32_0 = arith.constant 0 : i32
    return %c0_i32, %arg0 : i32, i32
  }
}

</mosaic_0001>

<bundles_post_ra>
// kernel: tpu_custom_call.1
= control target key start
LH: loop header
LB: loop body
LE: loop exit
PB: predicated region body
PF: predicated region fallthrough
CT: control target
= control target key end

     0   :  { %7 = vsyncpa [#allocation3], 0  ;;  %s6245_s0 = inlined_call_operand.vmem [shape: f32[300,32], index: 0, kind: input, shape index: {}]   ;;  %s6246_s1 = inlined_call_operand.vmem [shape: s32[300,1], index: 1, kind: input, shape index: {}]   ;;  %s6247_s2 = inlined_call_operand.hbm [shape: f32[1,300], index: 2, kind: output, shape index: {}]  }
   0x1   :  { %9 = vsyncpa [#allocation3 + $0x1], 0  ;;  %s4525_s9 = smov 0   ;;  %s4527_s10 = smov 0  }
   0x2   :  { %s4529_s11 = smov 0   ;;  %s4531_s12 = smov 0  }
   0x3 LB: > { %s4546_s13 = sadd.s32 4294967295, %s4505_s12   ;;  %s4194_s14 = sadd.s32 4294967294, %s4505_s12   ;;  %s4505_s12 = sphi %s4531_s12, %s6311_s12   ;;  %s4501_s11 = sphi %s4529_s11, %s6310_s11   ;;  %s4497_s10 = sphi %s4527_s10, %s6309_s10   ;;  %s4493_s9 = sphi %s4525_s9, %s6308_s9  }
   0x4   : > { %s4550_s15 = sadd.s32 1, %s4505_s12   ;;  %s74_s16 = sadd.s32 1, %s4501_s11 }
   0x5   : > { %s71_s17 = ssub.s32 %s4505_s12, %s4550_s15  ;;  %p84_p0 = scmp.ne.s32.totalorder %s4501_s11, %s4497_s10 }
   0x6   : > { %p72_p1 = scmp.eq.s32.totalorder %s71_s17, 0  ;;  %p85_p2 = scmp.eq.s32.totalorder %s4546_s13, 1 }
   0x7   : > { %p90_p3 = scmp.ne.s32.totalorder %s4497_s10, %s4493_s9  ;;  %p91_p4 = scmp.eq.s32.totalorder %s4194_s14, 1 }
   0x8   : > { %s4561_s18 = scalar_select %p72_p1, %s4501_s11, %s74_s16  }
   0x9   : > { %p4563_p5 = por %p85_p2, %p84_p0  ;;  %p4567_p6 = por %p91_p4, %p90_p3 }
   0xa   : > { %p4197_p7 = scmp.ge.s32.totalorder %s4505_s12, 1  ;;  %p143_p8 = scmp.lt.s32.totalorder %s4505_s12, 3 }
   0xc   : > { %p144_p9 = pnand %p4197_p7, %p143_p8 }
   0xe   : > { %147 = sbr.rel (%p144_p9) target bundleno = 980 (0x3d4), region = 28 }
  0x13   : > { %s4574_s21 = sshll.u32 %s4546_s13, 5  ;;  %vm275_vm0 = vcmask 261120   ;;  %s175_s30 = sand.u32 1, %s4497_s10  }
  0x14   : > { %p183_p10 = scmp.lt.s32.totalorder %s4574_s21, 37  ;;  %s4198_s3 = sshll.u32 %s175_s30, 1 }
  0x15   : > { %s177_s4 = scalar_lea.vmem [#allocation2], %s4198_s3  ;;  %s6198_s5 = scalar_lea.sflag [#allocation3], %s175_s30 }
  0x16   : > { %s4578_s22 = scalar_select %p183_p10, %s4574_s21, 37 }
  0x17   : > { %s4204_s6 = sshll.u32 (%p4563_p5), %s4546_s13, 1 }
  0x18   : > { %s4200_s23 = sshll.u32 %s4578_s22, 3  ;;  %s4112_s7 = ssub.s32 (%p4563_p5), 3, %s4204_s6 }
  0x19   : > { %s4586_s26 = scalar_lea.vmem %s6245_s0, %s4200_s23  ;;  %s4908_s29 = scalar_lea.vmem %s6246_s1, %s4200_s23 }
  0x1a   : > { %v4589_v0 = vld [vmem:[%s4586_s26] sm:$0xff]  ;;  %v4592_v1 = vld [vmem:[%s4586_s26 + $0x10] sm:$0xff]  ;;  %v4595_v2 = vld [vmem:[%s4586_s26 + $0x8] sm:$0xff]  ;;  %p4113_p11 = scmp.lt.s32.totalorder (%p4563_p5), %s4112_s7, 2 }
  0x1b   : > { %v276_v3 = vsel %vm275_vm0, %v4589_v0, -inf  ;;  %v282_v4 = vsel %vm275_vm0, %v4592_v1, -inf  ;;  %v4602_v5 = vld [vmem:[%s4586_s26 + $0x18] sm:$0xff]  ;;  %v279_v6 = vsel %vm275_vm0, %v4595_v2, -inf  ;;  %v4609_v8 = vld [vmem:[%s4586_s26 + $0x20] sm:$0xff]  ;;  %v4612_v9 = vld [vmem:[%s4586_s26 + $0x28] sm:$0xff] }
  0x1c   : > { %277 = vmax.xlane.f32.xlu0 %v276_v3  ;;  %283 = vmax.xlane.f32.xlu1 %v282_v4  ;;  %v285_v7 = vsel %vm275_vm0, %v4602_v5, -inf  ;;  %v288_v10 = vsel %vm275_vm0, %v4609_v8, -inf  ;;  %v291_v11 = vsel %vm275_vm0, %v4612_v9, -inf  ;;  %v4619_v12 = vld [vmem:[%s4586_s26 + $0x30] sm:$0xff]  ;;  %v4622_v13 = vld [vmem:[%s4586_s26 + $0x38] sm:$0xff]  ;;  %v4629_v16 = vld [vmem:[%s4586_s26 + $0x40] sm:$0xff] }
  0x1d   : > { %v294_v14 = vsel %vm275_vm0, %v4619_v12, -inf  ;;  %v297_v15 = vsel %vm275_vm0, %v4622_v13, -inf  ;;  %v4632_v17 = vld [vmem:[%s4586_s26 + $0x48] sm:$0xff]  ;;  %v300_v18 = vsel %vm275_vm0, %v4629_v16, -inf  ;;  %v4639_v20 = vld [vmem:[%s4586_s26 + $0x50] sm:$0xff]  ;;  %v4642_v21 = vld [vmem:[%s4586_s26 + $0x58] sm:$0xff] }
  0x1e   : > { %v303_v19 = vsel %vm275_vm0, %v4632_v17, -inf  ;;  %v306_v22 = vsel %vm275_vm0, %v4639_v20, -inf  ;;  %v309_v23 = vsel %vm275_vm0, %v4642_v21, -inf  ;;  %v4649_v24 = vld [vmem:[%s4586_s26 + $0x60] sm:$0xff]  ;;  %v4652_v25 = vld [vmem:[%s4586_s26 + $0x68] sm:$0xff]  ;;  %v4659_v28 = vld [vmem:[%s4586_s26 + $0x70] sm:$0xff] }
  0x1f   : > { %v312_v26 = vsel %vm275_vm0, %v4649_v24, -inf  ;;  %v315_v27 = vsel %vm275_vm0, %v4652_v25, -inf  ;;  %v4662_v29 = vld [vmem:[%s4586_s26 + $0x78] sm:$0xff]  ;;  %v318_v30 = vsel %vm275_vm0, %v4659_v28, -inf  ;;  %v4669_v32 = vld [vmem:[%s4586_s26 + $0x80] sm:$0xff]  ;;  %v4672_v33 = vld [vmem:[%s4586_s26 + $0x88] sm:$0xff] }
  0x20   : > { %280 = vmax.xlane.f32.xlu0 %v279_v6  ;;  %286 = vmax.xlane.f32.xlu1 %v285_v7  ;;  %v321_v31 = vsel %vm275_vm0, %v4662_v29, -inf  ;;  %v324_v34 = vsel %vm275_vm0, %v4669_v32, -inf  ;;  %v327_v35 = vsel %vm275_vm0, %v4672_v33, -inf  ;;  %v4679_v36 = vld [vmem:[%s4586_s26 + $0x90] sm:$0xff]  ;;  %v4682_v37 = vld [vmem:[%s4586_s26 + $0x98] sm:$0xff]  ;;  %v4689_v40 = vld [vmem:[%s4586_s26 + $0xa0] sm:$0xff] }
  0x21   : > { %v330_v38 = vsel %vm275_vm0, %v4679_v36, -inf  ;;  %v333_v39 = vsel %vm275_vm0, %v4682_v37, -inf  ;;  %v4692_v41 = vld [vmem:[%s4586_s26 + $0xa8] sm:$0xff]  ;;  %v336_v42 = vsel %vm275_vm0, %v4689_v40, -inf  ;;  %v4699_v44 = vld [vmem:[%s4586_s26 + $0xb0] sm:$0xff]  ;;  %v4702_v45 = vld [vmem:[%s4586_s26 + $0xb8] sm:$0xff] }
  0x22   : > { %v339_v43 = vsel %vm275_vm0, %v4692_v41, -inf  ;;  %v342_v46 = vsel %vm275_vm0, %v4699_v44, -inf  ;;  %v345_v47 = vsel %vm275_vm0, %v4702_v45, -inf  ;;  %v4709_v48 = vld [vmem:[%s4586_s26 + $0xc0] sm:$0xff]  ;;  %v4712_v49 = vld [vmem:[%s4586_s26 + $0xc8] sm:$0xff]  ;;  %v4719_v52 = vld [vmem:[%s4586_s26 + $0xd0] sm:$0xff] }
  0x23   : > { %v348_v50 = vsel %vm275_vm0, %v4709_v48, -inf  ;;  %v351_v51 = vsel %vm275_vm0, %v4712_v49, -inf  ;;  %v4722_v53 = vld [vmem:[%s4586_s26 + $0xd8] sm:$0xff]  ;;  %v354_v54 = vsel %vm275_vm0, %v4719_v52, -inf  ;;  %v4729_v56 = vld [vmem:[%s4586_s26 + $0xe0] sm:$0xff]  ;;  %v4732_v57 = vld [vmem:[%s4586_s26 + $0xe8] sm:$0xff] }
  0x24   : > { %289 = vmax.xlane.f32.xlu0 %v288_v10  ;;  %292 = vmax.xlane.f32.xlu1 %v291_v11  ;;  %v357_v55 = vsel %vm275_vm0, %v4722_v53, -inf  ;;  %v360_v58 = vsel %vm275_vm0, %v4729_v56, -inf  ;;  %v363_v59 = vsel %vm275_vm0, %v4732_v57, -inf  ;;  %v4739_v60 = vld [vmem:[%s4586_s26 + $0xf0] sm:$0xff]  ;;  %v4742_v61 = vld [vmem:[%s4586_s26 + $0xf8] sm:$0xff]  ;;  %v4507_v3 = vmov 0  }
  0x25   : > { %v366_v62 = vsel %vm275_vm0, %v4739_v60, -inf  ;;  %v369_v63 = vsel %vm275_vm0, %v4742_v61, -inf  ;;  %4252 = vset.pattern.permute.xlu1 %v4507_v3  ;;  %4251 = vset.pattern.permute.xlu0 %v4507_v3 }
  0x28   : > { %295 = vmax.xlane.f32.xlu0 %v294_v14  ;;  %298 = vmax.xlane.f32.xlu1 %v297_v15 }
  0x2c   : > { %301 = vmax.xlane.f32.xlu0 %v300_v18  ;;  %304 = vmax.xlane.f32.xlu1 %v303_v19 }
  0x30   : > { %307 = vmax.xlane.f32.xlu0 %v306_v22  ;;  %310 = vmax.xlane.f32.xlu1 %v309_v23 }
  0x34   : > { %313 = vmax.xlane.f32.xlu0 %v312_v26  ;;  %316 = vmax.xlane.f32.xlu1 %v315_v27 }
  0x38   : > { %319 = vmax.xlane.f32.xlu0 %v318_v30  ;;  %322 = vmax.xlane.f32.xlu1 %v321_v31 }
  0x3c   : > { %325 = vmax.xlane.f32.xlu0 %v324_v34  ;;  %328 = vmax.xlane.f32.xlu1 %v327_v35 }
  0x40   : > { %331 = vmax.xlane.f32.xlu0 %v330_v38  ;;  %334 = vmax.xlane.f32.xlu1 %v333_v39 }
  0x44   : > { %337 = vmax.xlane.f32.xlu0 %v336_v42  ;;  %340 = vmax.xlane.f32.xlu1 %v339_v43 }
  0x48   : > { %343 = vmax.xlane.f32.xlu0 %v342_v46  ;;  %346 = vmax.xlane.f32.xlu1 %v345_v47 }
  0x4c   : > { %349 = vmax.xlane.f32.xlu0 %v348_v50  ;;  %352 = vmax.xlane.f32.xlu1 %v351_v51 }
  0x50   : > { %355 = vmax.xlane.f32.xlu0 %v354_v54  ;;  %358 = vmax.xlane.f32.xlu1 %v357_v55 }
  0x54   : > { %361 = vmax.xlane.f32.xlu0 %v360_v58  ;;  %364 = vmax.xlane.f32.xlu1 %v363_v59 }
  0x58   : > { %367 = vmax.xlane.f32.xlu0 %v366_v62  ;;  %370 = vmax.xlane.f32.xlu1 %v369_v63 }
  0xa5   : > { %v278_v4 = vpop.xlane.xlu0 %277  ;;  %v284_v6 = vpop.xlane.xlu1 %283 }
  0xa6   : > { %v4749_v7 = vsub.f32 %v4589_v0, %v278_v4  ;;  %v4752_v10 = vsub.f32 %v4592_v1, %v284_v6 }
  0xa8   : > { %v404_v11 = vmul.f32 1.442695, %v4749_v7  ;;  %v408_v14 = vmul.f32 1.442695, %v4752_v10 }
  0xa9   : > { %v281_v15 = vpop.xlane.xlu0 %280  ;;  %v287_v18 = vpop.xlane.xlu1 %286 }
  0xaa   : > { %4253 = vpow2.f32 %v404_v11  ;;  %v4757_v19 = vsub.f32 %v4595_v2, %v281_v15  ;;  %v4760_v22 = vsub.f32 %v4602_v5, %v287_v18 }
  0xab   : > { %4255 = vpow2.f32 %v408_v14 }
  0xac   : > { %v406_v0 = vmul.f32 1.442695, %v4757_v19  ;;  %v410_v23 = vmul.f32 1.442695, %v4760_v22 }
  0xad   : > { %v290_v1 = vpop.xlane.xlu0 %289  ;;  %v293_v26 = vpop.xlane.xlu1 %292 }
  0xae   : > { %4257 = vpow2.f32 %v406_v0  ;;  %v4765_v27 = vsub.f32 %v4609_v8, %v290_v1  ;;  %v4768_v30 = vsub.f32 %v4612_v9, %v293_v26 }
  0xaf   : > { %4259 = vpow2.f32 %v410_v23 }
  0xb0   : > { %v412_v2 = vmul.f32 1.442695, %v4765_v27  ;;  %v414_v5 = vmul.f32 1.442695, %v4768_v30 }
  0xb1   : > { %v296_v31 = vpop.xlane.xlu0 %295  ;;  %v299_v34 = vpop.xlane.xlu1 %298 }
  0xb2   : > { %4261 = vpow2.f32 %v412_v2  ;;  %v4773_v35 = vsub.f32 %v4619_v12, %v296_v31  ;;  %v4776_v38 = vsub.f32 %v4622_v13, %v299_v34 }
  0xb3   : > { %4263 = vpow2.f32 %v414_v5 }
  0xb4   : > { %v416_v8 = vmul.f32 1.442695, %v4773_v35  ;;  %v418_v9 = vmul.f32 1.442695, %v4776_v38 }
  0xb5   : > { %v302_v39 = vpop.xlane.xlu0 %301  ;;  %v305_v42 = vpop.xlane.xlu1 %304 }
  0xb6   : > { %4265 = vpow2.f32 %v416_v8  ;;  %v4781_v43 = vsub.f32 %v4629_v16, %v302_v39  ;;  %v4784_v46 = vsub.f32 %v4632_v17, %v305_v42 }
  0xb7   : > { %v4254_v47 = vpop.eup %4253  ;;  %4267 = vpow2.f32 %v418_v9 }
  0xb8   : > { %v4256_v12 = vpop.eup %4255  ;;  %v420_v13 = vmul.f32 1.442695, %v4781_v43  ;;  %v422_v50 = vmul.f32 1.442695, %v4784_v46  ;;  %v468_v51 = vsel %vm275_vm0, %v4254_v47, 0.0 }
  0xb9   : > { %469 = vadd.xlane.f32.xlu0 %v468_v51  ;;  %v308_v54 = vpop.xlane.xlu0 %307  ;;  %v311_v55 = vpop.xlane.xlu1 %310  ;;  %v474_v17 = vsel %vm275_vm0, %v4256_v12, 0.0 }
  0xba   : > { %4269 = vpow2.f32 %v420_v13  ;;  %v4790_v58 = vsub.f32 %v4639_v20, %v308_v54  ;;  %v4793_v16 = vsub.f32 %v4642_v21, %v311_v55 }
  0xbb   : > { %v4258_v59 = vpop.eup %4257  ;;  %4271 = vpow2.f32 %v422_v50 }
  0xbc   : > { %v4260_v62 = vpop.eup %4259  ;;  %v424_v63 = vmul.f32 1.442695, %v4790_v58  ;;  %v426_v3 = vmul.f32 1.442695, %v4793_v16  ;;  %v471_v4 = vsel %vm275_vm0, %v4258_v59, 0.0 }
  0xbd   : > { %475 = vadd.xlane.f32.xlu0 %v474_v17  ;;  %472 = vadd.xlane.f32.xlu1 %v471_v4  ;;  %v314_v6 = vpop.xlane.xlu0 %313  ;;  %v317_v11 = vpop.xlane.xlu1 %316  ;;  %v477_v14 = vsel %vm275_vm0, %v4260_v62, 0.0 }
  0xbe   : > { %4273 = vpow2.f32 %v424_v63  ;;  %v4800_v20 = vsub.f32 %v4649_v24, %v314_v6  ;;  %v4803_v21 = vsub.f32 %v4652_v25, %v317_v11 }
  0xbf   : > { %v4262_v15 = vpop.eup %4261  ;;  %4275 = vpow2.f32 %v426_v3 }
  0xc0   : > { %v4264_v18 = vpop.eup %4263  ;;  %v428_v0 = vmul.f32 1.442695, %v4800_v20  ;;  %v430_v23 = vmul.f32 1.442695, %v4803_v21  ;;  %v480_v1 = vsel %vm275_vm0, %v4262_v15, 0.0 }
  0xc1   : > { %478 = vadd.xlane.f32.xlu1 %v477_v14  ;;  %481 = vadd.xlane.f32.xlu0 %v480_v1  ;;  %v320_v26 = vpop.xlane.xlu0 %319  ;;  %v323_v2 = vpop.xlane.xlu1 %322  ;;  %v483_v5 = vsel %vm275_vm0, %v4264_v18, 0.0 }
  0xc2   : > { %4277 = vpow2.f32 %v428_v0  ;;  %v4810_v24 = vsub.f32 %v4659_v28, %v320_v26  ;;  %v4813_v25 = vsub.f32 %v4662_v29, %v323_v2 }
  0xc3   : > { %v4266_v31 = vpop.eup %4265  ;;  %4279 = vpow2.f32 %v430_v23 }
  0xc4   : > { %v4268_v34 = vpop.eup %4267  ;;  %v432_v8 = vmul.f32 1.442695, %v4810_v24  ;;  %v434_v9 = vmul.f32 1.442695, %v4813_v25  ;;  %v486_v39 = vsel %vm275_vm0, %v4266_v31, 0.0 }
  0xc5   : > { %484 = vadd.xlane.f32.xlu1 %v483_v5  ;;  %487 = vadd.xlane.f32.xlu0 %v486_v39  ;;  %v326_v42 = vpop.xlane.xlu0 %325  ;;  %v329_v47 = vpop.xlane.xlu1 %328  ;;  %v489_v12 = vsel %vm275_vm0, %v4268_v34, 0.0 }
  0xc6   : > { %4281 = vpow2.f32 %v432_v8  ;;  %v4820_v28 = vsub.f32 %v4669_v32, %v326_v42  ;;  %v4823_v29 = vsub.f32 %v4672_v33, %v329_v47 }
  0xc7   : > { %v4270_v13 = vpop.eup %4269  ;;  %4283 = vpow2.f32 %v434_v9 }
  0xc8   : > { %v4272_v50 = vpop.eup %4271  ;;  %v436_v51 = vmul.f32 1.442695, %v4820_v28  ;;  %v438_v54 = vmul.f32 1.442695, %v4823_v29  ;;  %v492_v55 = vsel %vm275_vm0, %v4270_v13, 0.0 }
  0xc9   : > { %490 = vadd.xlane.f32.xlu1 %v489_v12  ;;  %493 = vadd.xlane.f32.xlu0 %v492_v55  ;;  %v332_v17 = vpop.xlane.xlu0 %331  ;;  %v335_v59 = vpop.xlane.xlu1 %334  ;;  %v495_v62 = vsel %vm275_vm0, %v4272_v50, 0.0 }
  0xca   : > { %4285 = vpow2.f32 %v436_v51  ;;  %v4830_v32 = vsub.f32 %v4679_v36, %v332_v17  ;;  %v4833_v33 = vsub.f32 %v4682_v37, %v335_v59 }
  0xcb   : > { %v4274_v63 = vpop.eup %4273  ;;  %4287 = vpow2.f32 %v438_v54 }
  0xcc   : > { %v4276_v3 = vpop.eup %4275  ;;  %v440_v4 = vmul.f32 1.442695, %v4830_v32  ;;  %v442_v6 = vmul.f32 1.442695, %v4833_v33  ;;  %v498_v11 = vsel %vm275_vm0, %v4274_v63, 0.0 }
  0xcd   : > { %496 = vadd.xlane.f32.xlu1 %v495_v62  ;;  %499 = vadd.xlane.f32.xlu0 %v498_v11  ;;  %v338_v14 = vpop.xlane.xlu0 %337  ;;  %v341_v15 = vpop.xlane.xlu1 %340  ;;  %v501_v18 = vsel %vm275_vm0, %v4276_v3, 0.0 }
  0xce   : > { %4289 = vpow2.f32 %v440_v4  ;;  %v4840_v36 = vsub.f32 %v4689_v40, %v338_v14  ;;  %v4843_v37 = vsub.f32 %v4692_v41, %v341_v15 }
  0xcf   : > { %v4278_v0 = vpop.eup %4277  ;;  %4291 = vpow2.f32 %v442_v6 }
  0xd0   : > { %v4280_v23 = vpop.eup %4279  ;;  %v444_v1 = vmul.f32 1.442695, %v4840_v36  ;;  %v446_v26 = vmul.f32 1.442695, %v4843_v37  ;;  %v504_v2 = vsel %vm275_vm0, %v4278_v0, 0.0 }
  0xd1   : > { %502 = vadd.xlane.f32.xlu1 %v501_v18  ;;  %505 = vadd.xlane.f32.xlu0 %v504_v2  ;;  %v344_v5 = vpop.xlane.xlu0 %343  ;;  %v347_v31 = vpop.xlane.xlu1 %346  ;;  %v507_v34 = vsel %vm275_vm0, %v4280_v23, 0.0 }
  0xd2   : > { %4293 = vpow2.f32 %v444_v1  ;;  %v4850_v40 = vsub.f32 %v4699_v44, %v344_v5  ;;  %v4853_v41 = vsub.f32 %v4702_v45, %v347_v31 }
  0xd3   : > { %v4282_v8 = vpop.eup %4281  ;;  %4295 = vpow2.f32 %v446_v26 }
  0xd4   : > { %v4284_v9 = vpop.eup %4283  ;;  %v448_v39 = vmul.f32 1.442695, %v4850_v40  ;;  %v450_v42 = vmul.f32 1.442695, %v4853_v41  ;;  %v510_v47 = vsel %vm275_vm0, %v4282_v8, 0.0 }
  0xd5   : > { %508 = vadd.xlane.f32.xlu1 %v507_v34  ;;  %511 = vadd.xlane.f32.xlu0 %v510_v47  ;;  %v350_v12 = vpop.xlane.xlu0 %349  ;;  %v353_v13 = vpop.xlane.xlu1 %352  ;;  %v513_v50 = vsel %vm275_vm0, %v4284_v9, 0.0 }
  0xd6   : > { %4297 = vpow2.f32 %v448_v39  ;;  %v4860_v44 = vsub.f32 %v4709_v48, %v350_v12  ;;  %v4863_v45 = vsub.f32 %v4712_v49, %v353_v13 }
  0xd7   : > { %v4286_v51 = vpop.eup %4285  ;;  %4299 = vpow2.f32 %v450_v42 }
  0xd8   : > { %v4288_v54 = vpop.eup %4287  ;;  %v452_v55 = vmul.f32 1.442695, %v4860_v44  ;;  %v454_v17 = vmul.f32 1.442695, %v4863_v45  ;;  %v516_v59 = vsel %vm275_vm0, %v4286_v51, 0.0 }
  0xd9   : > { %514 = vadd.xlane.f32.xlu1 %v513_v50  ;;  %517 = vadd.xlane.f32.xlu0 %v516_v59  ;;  %v356_v62 = vpop.xlane.xlu0 %355  ;;  %v359_v63 = vpop.xlane.xlu1 %358  ;;  %v519_v3 = vsel %vm275_vm0, %v4288_v54, 0.0 }
  0xda   : > { %4301 = vpow2.f32 %v452_v55  ;;  %v4870_v48 = vsub.f32 %v4719_v52, %v356_v62  ;;  %v4873_v49 = vsub.f32 %v4722_v53, %v359_v63 }
  0xdb   : > { %v4290_v4 = vpop.eup %4289  ;;  %4303 = vpow2.f32 %v454_v17 }
  0xdc   : > { %v4292_v6 = vpop.eup %4291  ;;  %v456_v11 = vmul.f32 1.442695, %v4870_v48  ;;  %v458_v14 = vmul.f32 1.442695, %v4873_v49  ;;  %v522_v15 = vsel %vm275_vm0, %v4290_v4, 0.0 }
  0xdd   : > { %520 = vadd.xlane.f32.xlu1 %v519_v3  ;;  %523 = vadd.xlane.f32.xlu0 %v522_v15  ;;  %v362_v18 = vpop.xlane.xlu0 %361  ;;  %v365_v0 = vpop.xlane.xlu1 %364  ;;  %v525_v23 = vsel %vm275_vm0, %v4292_v6, 0.0  ;;  %v211_v15 = vld [vmem:[%s4908_s29] sm:$0xff] }
  0xde   : > { %4305 = vpow2.f32 %v456_v11  ;;  %v4880_v52 = vsub.f32 %v4729_v56, %v362_v18  ;;  %v4883_v53 = vsub.f32 %v4732_v57, %v365_v0  ;;  %v212_v11 = vld [vmem:[%s4908_s29 + $0x8] sm:$0xff]  ;;  %v214_v18 = vld [vmem:[%s4908_s29 + $0x18] sm:$0xff] }
  0xdf   : > { %v4294_v1 = vpop.eup %4293  ;;  %4307 = vpow2.f32 %v458_v14  ;;  %v213_v14 = vld [vmem:[%s4908_s29 + $0x10] sm:$0xff]  ;;  %v220_v0 = vld [vmem:[%s4908_s29 + $0x48] sm:$0xff] }
  0xe0   : > { %v4296_v26 = vpop.eup %4295  ;;  %v460_v2 = vmul.f32 1.442695, %v4880_v52  ;;  %v462_v5 = vmul.f32 1.442695, %v4883_v53  ;;  %v528_v31 = vsel %vm275_vm0, %v4294_v1, 0.0  ;;  %v222_v1 = vld [vmem:[%s4908_s29 + $0x58] sm:$0xff] }
  0xe1   : > { %526 = vadd.xlane.f32.xlu1 %v525_v23  ;;  %529 = vadd.xlane.f32.xlu0 %v528_v31  ;;  %v368_v34 = vpop.xlane.xlu0 %367  ;;  %v531_v57 = vsel %vm275_vm0, %v4296_v26, 0.0  ;;  %v215_v23 = vld [vmem:[%s4908_s29 + $0x20] sm:$0xff]  ;;  %v216_v26 = vld [vmem:[%s4908_s29 + $0x28] sm:$0xff]  ;;  %v226_v31 = vld [vmem:[%s4908_s29 + $0x78] sm:$0xff] }
  0xe2   : > { %4309 = vpow2.f32 %v460_v2  ;;  %v4890_v56 = vsub.f32 %v4739_v60, %v368_v34  ;;  %v224_v2 = vld [vmem:[%s4908_s29 + $0x68] sm:$0xff]  ;;  %v218_v34 = vld [vmem:[%s4908_s29 + $0x38] sm:$0xff] }
  0xe3   : > { %v4298_v8 = vpop.eup %4297  ;;  %4311 = vpow2.f32 %v462_v5  ;;  %v217_v5 = vld [vmem:[%s4908_s29 + $0x30] sm:$0xff] }
  0xe4   : > { %v4300_v9 = vpop.eup %4299  ;;  %v464_v39 = vmul.f32 1.442695, %v4890_v56  ;;  %v534_v42 = vsel %vm275_vm0, %v4298_v8, 0.0  ;;  %v230_v8 = vld [vmem:[%s4908_s29 + $0x98] sm:$0xff] }
  0xe5   : > { %532 = vadd.xlane.f32.xlu1 %v531_v57  ;;  %535 = vadd.xlane.f32.xlu0 %v534_v42  ;;  %v537_v47 = vsel %vm275_vm0, %v4300_v9, 0.0  ;;  %v228_v57 = vld [vmem:[%s4908_s29 + $0x88] sm:$0xff] }
  0xe6   : > { %4313 = vpow2.f32 %v464_v39  ;;  %v232_v9 = vld [vmem:[%s4908_s29 + $0xa8] sm:$0xff]  ;;  %v371_v39 = vpop.xlane.xlu1 %370 }
  0xe7   : > { %v4302_v12 = vpop.eup %4301  ;;  %v4926_v42 = vsub.f32 %v4742_v61, %v371_v39 }
  0xe8   : > { %v4304_v13 = vpop.eup %4303  ;;  %v540_v50 = vsel %vm275_vm0, %v4302_v12, 0.0 }
  0xe9   : > { %538 = vadd.xlane.f32.xlu1 %v537_v47  ;;  %541 = vadd.xlane.f32.xlu0 %v540_v50  ;;  %v543_v60 = vsel %vm275_vm0, %v4304_v13, 0.0  ;;  %v234_v47 = vld [vmem:[%s4908_s29 + $0xb8] sm:$0xff]  ;;  %v466_v12 = vmul.f32 1.442695, %v4926_v42  ;;  %v236_v13 = vld [vmem:[%s4908_s29 + $0xc8] sm:$0xff] }
  0xea   : > { %v238_v50 = vld [vmem:[%s4908_s29 + $0xd8] sm:$0xff] }
  0xeb   : > { %v4306_v51 = vpop.eup %4305  ;;  %4315 = vpow2.f32 %v466_v12  ;;  %v231_v12 = vld [vmem:[%s4908_s29 + $0xa0] sm:$0xff] }
  0xec   : > { %v4308_v54 = vpop.eup %4307  ;;  %v546_v55 = vsel %vm275_vm0, %v4306_v51, 0.0  ;;  %v242_v51 = vld [vmem:[%s4908_s29 + $0xf8] sm:$0xff] }
  0xed   : > { %544 = vadd.xlane.f32.xlu1 %v543_v60  ;;  %547 = vadd.xlane.f32.xlu0 %v546_v55  ;;  %v549_v17 = vsel %vm275_vm0, %v4308_v54, 0.0  ;;  %v240_v60 = vld [vmem:[%s4908_s29 + $0xe8] sm:$0xff] }
  0xef   : > { %v4310_v59 = vpop.eup %4309 }
  0xf0   : > { %v4312_v62 = vpop.eup %4311  ;;  %v552_v63 = vsel %vm275_vm0, %v4310_v59, 0.0 }
  0xf1   : > { %550 = vadd.xlane.f32.xlu1 %v549_v17  ;;  %553 = vadd.xlane.f32.xlu0 %v552_v63  ;;  %v555_v3 = vsel %vm275_vm0, %v4312_v62, 0.0 }
  0xf3   : > { %v4314_v4 = vpop.eup %4313 }
  0xf4   : > { %v558_v6 = vsel %vm275_vm0, %v4314_v4, 0.0 }
  0xf5   : > { %556 = vadd.xlane.f32.xlu1 %v555_v3  ;;  %559 = vadd.xlane.f32.xlu0 %v558_v6  ;;  %v219_v6 = vld [vmem:[%s4908_s29 + $0x40] sm:$0xff] }
  0xf8   : > { %v4316_v54 = vpop.eup %4315 }
  0xf9   : > { %v561_v55 = vsel %vm275_vm0, %v4316_v54, 0.0 }
 0x106   : > { %634 = vperm.xlu1 %4252, %v212_v11  }
 0x10a   : > { %637 = vperm.xlu1 %4252, %v213_v14  }
 0x10b   : > { %631 = vperm.xlu0 %4251, %v211_v15   ;;  %v221_v15 = vld [vmem:[%s4908_s29 + $0x50] sm:$0xff] }
 0x10e   : > { %640 = vperm.xlu1 %4252, %v214_v18  }
 0x10f   : > { %658 = vperm.xlu0 %4251, %v220_v0  }
 0x112   : > { %643 = vperm.xlu1 %4252, %v215_v23   ;;  %v223_v23 = vld [vmem:[%s4908_s29 + $0x60] sm:$0xff] }
 0x113   : > { %664 = vperm.xlu0 %4251, %v222_v1  }
 0x116   : > { %646 = vperm.xlu1 %4252, %v216_v26  }
 0x117   : > { %670 = vperm.xlu0 %4251, %v224_v2   ;;  %v225_v2 = vld [vmem:[%s4908_s29 + $0x70] sm:$0xff] }
 0x11a   : > { %649 = vperm.xlu1 %4252, %v217_v5  }
 0x11b   : > { %676 = vperm.xlu0 %4251, %v226_v31  }
 0x11e   : > { %652 = vperm.xlu1 %4252, %v218_v34   ;;  %v227_v34 = vld [vmem:[%s4908_s29 + $0x80] sm:$0xff] }
 0x11f   : > { %682 = vperm.xlu0 %4251, %v228_v57  }
 0x123   : > { %688 = vperm.xlu0 %4251, %v230_v8  }
 0x127   : > { %694 = vperm.xlu0 %4251, %v232_v9   ;;  %v229_v9 = vld [vmem:[%s4908_s29 + $0x90] sm:$0xff] }
 0x12b   : > { %700 = vperm.xlu0 %4251, %v234_v47  }
 0x12f   : > { %706 = vperm.xlu0 %4251, %v236_v13  }
 0x133   : > { %712 = vperm.xlu0 %4251, %v238_v50  }
 0x137   : > { %718 = vperm.xlu0 %4251, %v240_v60   ;;  %v233_v60 = vld [vmem:[%s4908_s29 + $0xb0] sm:$0xff] }
 0x13b   : > { %724 = vperm.xlu0 %4251, %v242_v51  }
 0x142   : > { %562 = vadd.xlane.f32.xlu1 %v561_v55  ;;  %v4935_v61 = vpop.xlane.xlu0 %469  ;;  %v235_v55 = vld [vmem:[%s4908_s29 + $0xc0] sm:$0xff] }
 0x146   : > { %v4937_v17 = vpop.xlane.xlu1 %472  ;;  %v4939_v59 = vpop.xlane.xlu0 %475 }
 0x147   : > { %4317 = vlog2.f32 %v4937_v17 }
 0x148   : > { %4319 = vlog2.f32 %v4939_v59 }
 0x14a   : > { %v4941_v62 = vpop.xlane.xlu1 %478  ;;  %v4943_v63 = vpop.xlane.xlu0 %481 }
 0x14b   : > { %4321 = vlog2.f32 %v4943_v63 }
 0x14e   : > { %v4945_v3 = vpop.xlane.xlu1 %484  ;;  %v4947_v4 = vpop.xlane.xlu0 %487 }
 0x152   : > { %v4950_v11 = vpop.xlane.xlu1 %490  ;;  %v4952_v14 = vpop.xlane.xlu0 %493 }
 0x153   : > { %655 = vperm.xlu1 %4252, %v219_v6  }
 0x156   : > { %v4955_v18 = vpop.xlane.xlu1 %496  ;;  %v4957_v0 = vpop.xlane.xlu0 %499 }
 0x157   : > { %661 = vperm.xlu1 %4252, %v221_v15  }
 0x15a   : > { %v4960_v1 = vpop.xlane.xlu1 %502  ;;  %v4962_v26 = vpop.xlane.xlu0 %505 }
 0x15b   : > { %667 = vperm.xlu1 %4252, %v223_v23   ;;  %v237_v23 = vld [vmem:[%s4908_s29 + $0xd0] sm:$0xff] }
 0x15e   : > { %v4965_v5 = vpop.xlane.xlu1 %508  ;;  %v4967_v31 = vpop.xlane.xlu0 %511 }
 0x15f   : > { %673 = vperm.xlu1 %4252, %v225_v2  }
 0x162   : > { %v4970_v57 = vpop.xlane.xlu1 %514  ;;  %v4972_v8 = vpop.xlane.xlu0 %517 }
 0x163   : > { %679 = vperm.xlu1 %4252, %v227_v34  }
 0x166   : > { %v4975_v39 = vpop.xlane.xlu1 %520  ;;  %v4977_v47 = vpop.xlane.xlu0 %523 }
 0x167   : > { %6265 = vst [vmem:[#allocation5_spill] sm:$0xff] %v4977_v47  ;;  %685 = vperm.xlu1 %4252, %v229_v9   ;;  %v239_v9 = vld [vmem:[%s4908_s29 + $0xe0] sm:$0xff] }
 0x16a   : > { %v4980_v13 = vpop.xlane.xlu1 %526  ;;  %v4982_v50 = vpop.xlane.xlu0 %529 }
 0x16b   : > { %6266 = vst [vmem:[#allocation6_spill] sm:$0xff] %v4982_v50  ;;  %691 = vperm.xlu1 %4252, %v231_v12  }
 0x16e   : > { %v4985_v51 = vpop.xlane.xlu1 %532  ;;  %v4987_v54 = vpop.xlane.xlu0 %535 }
 0x16f   : > { %6267 = vst [vmem:[#allocation7_spill] sm:$0xff] %v4987_v54  ;;  %697 = vperm.xlu1 %4252, %v233_v60   ;;  %v6248_v54 = vlaneseq  ;;  %v241_v60 = vld [vmem:[%s4908_s29 + $0xf0] sm:$0xff] }
 0x172   : > { %v4990_v6 = vpop.xlane.xlu1 %538  ;;  %v4992_v15 = vpop.xlane.xlu0 %541 }
 0x173   : > { %6268 = vst [vmem:[#allocation8_spill] sm:$0xff] %v4990_v6  ;;  %6269 = vst [vmem:[#allocation9_spill] sm:$0xff] %v4992_v15  ;;  %703 = vperm.xlu1 %4252, %v235_v55   ;;  %v5008_v15 = vand.u32 127, %v6248_v54 }
 0x175   : > { %6275 = vst [vmem:[#allocation15_spill] sm:$0xff] %v5008_v15 }
 0x176   : > { %v4995_v2 = vpop.xlane.xlu1 %544  ;;  %v4997_v34 = vpop.xlane.xlu0 %547 }
 0x177   : > { %6270 = vst [vmem:[#allocation10_spill] sm:$0xff] %v4995_v2  ;;  %6271 = vst [vmem:[#allocation11_spill] sm:$0xff] %v4997_v34  ;;  %709 = vperm.xlu1 %4252, %v237_v23  }
 0x17a   : > { %v5000_v12 = vpop.xlane.xlu1 %550  ;;  %v5002_v50 = vpop.xlane.xlu0 %553 }
 0x17b   : > { %6272 = vst [vmem:[#allocation12_spill] sm:$0xff] %v5000_v12  ;;  %6273 = vst [vmem:[#allocation13_spill] sm:$0xff] %v5002_v50  ;;  %715 = vperm.xlu1 %4252, %v239_v9  }
 0x17e   : > { %v5005_v47 = vpop.xlane.xlu1 %556  ;;  %v5010_v55 = vpop.xlane.xlu0 %559 }
 0x17f   : > { %6274 = vst [vmem:[#allocation14_spill] sm:$0xff] %v5005_v47  ;;  %721 = vperm.xlu1 %4252, %v241_v60   ;;  %6276 = vst [vmem:[#allocation16_spill] sm:$0xff] %v5010_v55 }
 0x182   : > { %v635_v2 = vpop.permute.xlu1 %634 }
 0x183   : > { %vm727_vm1 = vcmp.eq.s32.totalorder %v5008_v15, %v635_v2 }
 0x184   : > { %v759_v23 = vsel %vm727_vm1, %v4757_v19, 0.0 }
 0x185   : > { %v793_v12 = vsel %vm275_vm0, %v759_v23, 0.0 }
 0x186   : > { %v638_v34 = vpop.permute.xlu1 %637  ;;  %794 = vadd.xlane.f32.xlu0 %v793_v12  ;;  %v632_v9 = vpop.permute.xlu0 %631 }
 0x187   : > { %vm728_vm2 = vcmp.eq.s32.totalorder %v5008_v15, %v638_v34  ;;  %vm726_vm4 = vcmp.eq.s32.totalorder %v5008_v15, %v632_v9 }
 0x188   : > { %v760_v47 = vsel %vm728_vm2, %v4752_v10, 0.0  ;;  %v758_v10 = vsel %vm726_vm4, %v4749_v7, 0.0 }
 0x189   : > { %v796_v60 = vsel %vm275_vm0, %v760_v47, 0.0 }
 0x18a   : > { %v641_v54 = vpop.permute.xlu1 %640  ;;  %797 = vadd.xlane.f32.xlu0 %v796_v60  ;;  %v5018_v50 = vpop.permute.xlu0 %658 }
 0x18b   : > { %vm729_vm5 = vcmp.eq.s32.totalorder %v5008_v15, %v641_v54  ;;  %vm735_vm4 = vcmp.eq.s32.totalorder %v5008_v15, %v5018_v50 }
 0x18e   : > { %v644_v55 = vpop.permute.xlu1 %643  ;;  %v5021_v2 = vpop.permute.xlu0 %664 }
 0x18f   : > { %vm730_vm3 = vcmp.eq.s32.totalorder %v5008_v15, %v644_v55  ;;  %v790_v55 = vsel %vm275_vm0, %v758_v10, 0.0 }
 0x190   : > { %v762_v19 = vsel %vm730_vm3, %v4765_v27, 0.0  ;;  %v761_v27 = vsel %vm729_vm5, %v4760_v22, 0.0 }
 0x191   : > { %v802_v12 = vsel %vm275_vm0, %v762_v19, 0.0  ;;  %v799_v19 = vsel %vm275_vm0, %v761_v27, 0.0 }
 0x192   : > { %803 = vadd.xlane.f32.xlu0 %v802_v12  ;;  %v5025_v23 = vpop.permute.xlu0 %670  ;;  %v647_v47 = vpop.permute.xlu1 %646 }
 0x193   : > { %vm731_vm6 = vcmp.eq.s32.totalorder %v5008_v15, %v647_v47 }
 0x194   : > { %v763_v12 = vsel %vm731_vm6, %v4768_v30, 0.0 }
 0x195   : > { %v805_v7 = vsel %vm275_vm0, %v763_v12, 0.0 }
 0x196   : > { %v5027_v34 = vpop.permute.xlu0 %676 }
 0x19a   : > { %v683_v60 = vpop.permute.xlu0 %682 }
 0x19b   : > { %vm743_vm7 = vcmp.eq.s32.totalorder %v5008_v15, %v683_v60 }
 0x19c   : > { %v775_v54 = vsel %vm743_vm7, %v4823_v29, 0.0  ;;  %v650_v29 = vpop.permute.xlu1 %649 }
 0x19d   : > { %v841_v22 = vsel %vm275_vm0, %v775_v54, 0.0  ;;  %vm732_vm12 = vcmp.eq.s32.totalorder %v5008_v15, %v650_v29 }
 0x19e   : > { %v689_v6 = vpop.permute.xlu0 %688 }
 0x19f   : > { %vm745_vm8 = vcmp.eq.s32.totalorder %v5008_v15, %v689_v6 }
 0x1a0   : > { %v777_v10 = vsel %vm745_vm8, %v4833_v33, 0.0  ;;  %vm737_vm8 = vcmp.eq.s32.totalorder %v5008_v15, %v5021_v2 }
 0x1a1   : > { %v847_v30 = vsel %vm275_vm0, %v777_v10, 0.0 }
 0x1a2   : > { %v695_v9 = vpop.permute.xlu0 %694 }
 0x1a3   : > { %791 = vadd.xlane.f32.xlu1 %v790_v55  ;;  %vm747_vm9 = vcmp.eq.s32.totalorder %v5008_v15, %v695_v9  ;;  %v653_v55 = vpop.permute.xlu1 %652 }
 0x1a4   : > { %v779_v47 = vsel %vm747_vm9, %v4843_v37, 0.0  ;;  %vm733_vm14 = vcmp.eq.s32.totalorder %v5008_v15, %v653_v55 }
 0x1a5   : > { %v853_v60 = vsel %vm275_vm0, %v779_v47, 0.0 }
 0x1a6   : > { %v701_v47 = vpop.permute.xlu0 %700 }
 0x1a7   : > { %800 = vadd.xlane.f32.xlu1 %v799_v19  ;;  %vm749_vm15 = vcmp.eq.s32.totalorder %v5008_v15, %v701_v47  ;;  %v767_v47 = vsel %vm735_vm4, %v4784_v46, 0.0  ;;  %vm3917_vm4 = vcmask 261312  }
 0x1ab   : > { %806 = vadd.xlane.f32.xlu1 %v805_v7 }
 0x1af   : > { %842 = vadd.xlane.f32.xlu1 %v841_v22 }
 0x1b3   : > { %848 = vadd.xlane.f32.xlu1 %v847_v30 }
 0x1b7   : > { %854 = vadd.xlane.f32.xlu1 %v853_v60 }
 0x1cb   : > { %v5047_v27 = vpop.xlane.xlu1 %562 }
 0x1cf   : > { %v656_v6 = vpop.permute.xlu1 %655 }
 0x1d0   : > { %vm734_vm2 = vcmp.eq.s32.totalorder %v5008_v15, %v656_v6 }
 0x1d3   : > { %v662_v19 = vpop.permute.xlu1 %661 }
 0x1d4   : > { %vm736_vm6 = vcmp.eq.s32.totalorder %v5008_v15, %v662_v19 }
 0x1d7   : > { %v5049_v12 = vpop.permute.xlu1 %667 }
 0x1db   : > { %v5051_v33 = vpop.permute.xlu1 %673 }
 0x1df   : > { %v680_v7 = vpop.permute.xlu1 %679 }
 0x1e0   : > { %vm742_vm10 = vcmp.eq.s32.totalorder %v5008_v15, %v680_v7  ;;  %v764_v7 = vsel %vm732_vm12, %v4773_v35, 0.0  ;;  %v707_v35 = vpop.permute.xlu0 %706  ;;  %vm739_vm12 = vcmp.eq.s32.totalorder %v5008_v15, %v5025_v23 }
 0x1e1   : > { %v774_v54 = vsel %vm742_vm10, %v4820_v28, 0.0  ;;  %v808_v29 = vsel %vm275_vm0, %v764_v7, 0.0  ;;  %vm751_vm5 = vcmp.eq.s32.totalorder %v5008_v15, %v707_v35  ;;  %vm738_vm10 = vcmp.eq.s32.totalorder %v5008_v15, %v5049_v12 }
 0x1e2   : > { %v838_v37 = vsel %vm275_vm0, %v774_v54, 0.0 }
 0x1e3   : > { %v686_v9 = vpop.permute.xlu1 %685  ;;  %839 = vadd.xlane.f32.xlu0 %v838_v37 }
 0x1e4   : > { %vm744_vm11 = vcmp.eq.s32.totalorder %v5008_v15, %v686_v9  ;;  %v781_v9 = vsel %vm749_vm15, %v4853_v41, 0.0 }
 0x1e5   : > { %v776_v22 = vsel %vm744_vm11, %v4830_v32, 0.0 }
 0x1e6   : > { %v844_v10 = vsel %vm275_vm0, %v776_v22, 0.0 }
 0x1e7   : > { %v692_v30 = vpop.permute.xlu1 %691  ;;  %845 = vadd.xlane.f32.xlu0 %v844_v10  ;;  %v766_v10 = vsel %vm734_vm2, %v4781_v43, 0.0  ;;  %v713_v43 = vpop.permute.xlu0 %712 }
 0x1e8   : > { %vm746_vm13 = vcmp.eq.s32.totalorder %v5008_v15, %v692_v30  ;;  %v814_v41 = vsel %vm275_vm0, %v766_v10, 0.0  ;;  %vm753_vm9 = vcmp.eq.s32.totalorder %v5008_v15, %v713_v43 }
 0x1e9   : > { %v778_v60 = vsel %vm746_vm13, %v4840_v36, 0.0  ;;  %v765_v36 = vsel %vm733_vm14, %v4776_v38, 0.0  ;;  %vm740_vm14 = vcmp.eq.s32.totalorder %v5008_v15, %v5051_v33 }
 0x1ea   : > { %v850_v28 = vsel %vm275_vm0, %v778_v60, 0.0  ;;  %v811_v55 = vsel %vm275_vm0, %v765_v36, 0.0  ;;  %v783_v60 = vsel %vm751_vm5, %v4863_v45, 0.0  ;;  %v4318_v36 = vpop.eup %4317  ;;  %vm3924_vm5 = vcmask 326912  }
 0x1eb   : > { %v698_v54 = vpop.permute.xlu1 %697  ;;  %851 = vadd.xlane.f32.xlu0 %v850_v28  ;;  %v865_v50 = vsel %vm275_vm0, %v783_v60, 0.0  ;;  %v768_v28 = vsel %vm736_vm6, %v4790_v58, 0.0  ;;  %v785_v58 = vsel %vm753_vm9, %v4873_v49, 0.0  ;;  %v567_v33 = vmul.f32 0.6931472, %v4318_v36 }
 0x1ec   : > { %vm748_vm1 = vcmp.eq.s32.totalorder %v5008_v15, %v698_v54  ;;  %v820_v45 = vsel %vm275_vm0, %v768_v28, 0.0  ;;  %v769_v54 = vsel %vm737_vm8, %v4793_v16, 0.0  ;;  %v871_v2 = vsel %vm275_vm0, %v785_v58, 0.0 }
 0x1ed   : > { %v780_v32 = vsel %vm748_vm1, %v4850_v40, 0.0  ;;  %v859_v40 = vsel %vm275_vm0, %v781_v9, 0.0  ;;  %v823_v17 = vsel %vm275_vm0, %v769_v54, 0.0  ;;  %v772_v9 = vsel %vm740_vm14, %v4810_v24, 0.0 }
 0x1ee   : > { %v856_v37 = vsel %vm275_vm0, %v780_v32, 0.0  ;;  %v770_v32 = vsel %vm738_vm10, %v4800_v20, 0.0  ;;  %vm741_vm1 = vcmp.eq.s32.totalorder %v5008_v15, %v5027_v34  ;;  %vm3931_vm6 = vcmask 392512  }
 0x1ef   : > { %v704_v22 = vpop.permute.xlu1 %703  ;;  %809 = vadd.xlane.f32.xlu0 %v808_v29  ;;  %857 = vadd.xlane.f32.xlu1 %v856_v37  ;;  %v826_v12 = vsel %vm275_vm0, %v770_v32, 0.0  ;;  %v771_v29 = vsel %vm739_vm12, %v4803_v21, 0.0  ;;  %v773_v35 = vsel %vm741_vm1, %v4813_v25, 0.0  ;;  %vm3945_vm8 = vcmask 523712  }
 0x1f0   : > { %vm750_vm3 = vcmp.eq.s32.totalorder %v5008_v15, %v704_v22  ;;  %v4320_v22 = vpop.eup %4319  ;;  %v835_v10 = vsel %vm275_vm0, %v773_v35, 0.0  ;;  %vm3952_vm9 = vcmask 589312   ;;  %vm3959_vm10 = vcmask 654912  }
 0x1f1   : > { %v782_v30 = vsel %vm750_vm3, %v4860_v44, 0.0  ;;  %v817_v44 = vsel %vm275_vm0, %v767_v47, 0.0  ;;  %vm3910_vm3 = vcmask 195712   ;;  %vm3973_vm12 = vcmask 786112  }
 0x1f2   : > { %v862_v6 = vsel %vm275_vm0, %v782_v30, 0.0  ;;  %v569_v30 = vmul.f32 0.6931472, %v4320_v22  ;;  %vm3987_vm14 = vcmask 917312   ;;  %vm4001_vm1 = vcmask 1048512  }
 0x1f3   : > { %812 = vadd.xlane.f32.xlu0 %v811_v55  ;;  %860 = vadd.xlane.f32.xlu1 %v859_v40  ;;  %v710_v38 = vpop.permute.xlu1 %709 }
 0x1f4   : > { %vm752_vm7 = vcmp.eq.s32.totalorder %v5008_v15, %v710_v38 }
 0x1f5   : > { %v784_v7 = vsel %vm752_vm7, %v4870_v48, 0.0  ;;  %v719_v48 = vpop.permute.xlu0 %718  ;;  %vm3938_vm7 = vcmask 458112  }
 0x1f6   : > { %v868_v19 = vsel %vm275_vm0, %v784_v7, 0.0  ;;  %vm755_vm13 = vcmp.eq.s32.totalorder %v5008_v15, %v719_v48  ;;  %v6277_v48 = vlaneseq }
 0x1f7   : > { %815 = vadd.xlane.f32.xlu0 %v814_v41  ;;  %863 = vadd.xlane.f32.xlu1 %v862_v6  ;;  %v716_v46 = vpop.permute.xlu1 %715  ;;  %v787_v37 = vsel %vm755_vm13, %v4883_v53, 0.0  ;;  %v832_v53 = vsel %vm275_vm0, %v772_v9, 0.0  ;;  %v4322_v6 = vpop.eup %4321  ;;  %vm3980_vm13 = vcmask 851712  }
 0x1f8   : > { %vm754_vm11 = vcmp.eq.s32.totalorder %v5008_v15, %v716_v46  ;;  %v877_v23 = vsel %vm275_vm0, %v787_v37, 0.0 }
 0x1f9   : > { %v786_v16 = vsel %vm754_vm11, %v4880_v52, 0.0  ;;  %v725_v20 = vpop.permute.xlu0 %724  ;;  %v829_v52 = vsel %vm275_vm0, %v771_v29, 0.0  ;;  %vm3966_vm11 = vcmask 720512  }
 0x1fa   : > { %v874_v59 = vsel %vm275_vm0, %v786_v16, 0.0  ;;  %vm757_vm2 = vcmp.eq.s32.totalorder %v5008_v15, %v725_v20 }
 0x1fb   : > { %818 = vadd.xlane.f32.xlu0 %v817_v44  ;;  %866 = vadd.xlane.f32.xlu1 %v865_v50  ;;  %v722_v49 = vpop.permute.xlu1 %721  ;;  %v789_v55 = vsel %vm757_vm2, %v4926_v42, 0.0  ;;  %v573_v42 = vmul.f32 0.6931472, %v4322_v6 }
 0x1fc   : > { %vm756_vm15 = vcmp.eq.s32.totalorder %v5008_v15, %v722_v49  ;;  %v883_v34 = vsel %vm275_vm0, %v789_v55, 0.0 }
 0x1fd   : > { %v788_v21 = vsel %vm756_vm15, %v4890_v56, 0.0  ;;  %vm3994_vm15 = vcmask 982912  }
 0x1fe   : > { %v880_v63 = vsel %vm275_vm0, %v788_v21, 0.0  ;;  %vm3903_vm0 = vcmask 130112  }
 0x1ff   : > { %821 = vadd.xlane.f32.xlu0 %v820_v45  ;;  %869 = vadd.xlane.f32.xlu1 %v868_v19  ;;  %v4508_v45 = vmov 1966171168  }
 0x200   : > { %v2235_v19 = vunpack.c.l.s4 %v4508_v45 }
 0x203   : > { %824 = vadd.xlane.f32.xlu0 %v823_v17  ;;  %872 = vadd.xlane.f32.xlu1 %v871_v2 }
 0x207   : > { %827 = vadd.xlane.f32.xlu0 %v826_v12  ;;  %875 = vadd.xlane.f32.xlu1 %v874_v59  ;;  %v2236_v12 = vunpack.c.0.s8 %v2235_v19 }
 0x20b   : > { %830 = vadd.xlane.f32.xlu0 %v829_v52  ;;  %878 = vadd.xlane.f32.xlu1 %v877_v23 }
 0x20f   : > { %833 = vadd.xlane.f32.xlu0 %v832_v53  ;;  %881 = vadd.xlane.f32.xlu1 %v880_v63  ;;  %v795_v24 = vpop.xlane.xlu0 %794 }
 0x210   : > { %v887_v56 = vsub.f32 %v795_v24, %v567_v33 }
 0x212   : > { %v920_v40 = vmul.f32 1.442695, %v887_v56 }
 0x213   : > { %836 = vadd.xlane.f32.xlu0 %v835_v10  ;;  %884 = vadd.xlane.f32.xlu1 %v883_v34  ;;  %v798_v38 = vpop.xlane.xlu0 %797 }
 0x214   : > { %4323 = vpow2.f32 %v920_v40  ;;  %v888_v41 = vsub.f32 %v798_v38, %v569_v30 }
 0x215   : > { %4325 = vlog2.f32 %v4935_v61 }
 0x216   : > { %v922_v25 = vmul.f32 1.442695, %v888_v41  ;;  %4327 = vlog2.f32 %v4941_v62 }
 0x218   : > { %4329 = vpow2.f32 %v922_v25 }
 0x219   : > { %4331 = vlog2.f32 %v4945_v3  ;;  %v5138_v3 = vshrl.u32 %v6277_v48, 7 }
 0x21b   : > { %v804_v47 = vpop.xlane.xlu0 %803  ;;  %6278 = vst [vmem:[#allocation17_spill] sm:$0xff] %v5138_v3  ;;  %v5142_v37 = vsub.s32 0, %v5138_v3  ;;  %v5145_v20 = vsub.s32 1, %v5138_v3  ;;  %v5149_v52 = vsub.s32 2, %v5138_v3  ;;  %v5152_v23 = vsub.s32 3, %v5138_v3 }
 0x21c   : > { %v5134_v60 = vsub.f32 %v804_v47, %v573_v42  ;;  %v5158_v53 = vsub.s32 5, %v5138_v3  ;;  %v5161_v63 = vsub.s32 6, %v5138_v3  ;;  %v5167_v22 = vsub.s32 7, %v5138_v3 }
 0x21d   : > { %v5170_v35 = vsub.s32 %v2236_v12, %v5138_v3 }
 0x21e   : > { %v926_v43 = vmul.f32 1.442695, %v5134_v60  ;;  %6280 = vst [vmem:[#allocation19_spill] sm:$0xff] %v5158_v53  ;;  %6281 = vst [vmem:[#allocation20_spill] sm:$0xff] %v5161_v63 }
 0x21f   : > { %6282 = vst [vmem:[#allocation21_spill] sm:$0xff] %v5167_v22 }
 0x220   : > { %4333 = vpow2.f32 %v926_v43 }
 0x221   : > { %v4324_v44 = vpop.eup %4323  ;;  %4335 = vlog2.f32 %v4975_v39  ;;  %v5155_v39 = vsub.s32 4, %v5138_v3 }
 0x222   : > { %v983_v50 = vsub.f32 1.0, %v4324_v44  ;;  %v4326_v28 = vpop.eup %4325  ;;  %4337 = vlog2.f32 %v4980_v13 }
 0x223   : > { %v4328_v7 = vpop.eup %4327  ;;  %v565_v32 = vmul.f32 0.6931472, %v4326_v28  ;;  %6279 = vst [vmem:[#allocation18_spill] sm:$0xff] %v5155_v39  ;;  %4339 = vlog2.f32 %v4985_v51 }
 0x224   : > { %v1015_v46 = vmax.f32 %v983_v50, 0.0  ;;  %v571_v16 = vmul.f32 0.6931472, %v4328_v7 }
 0x225   : > { %v4330_v61 = vpop.eup %4329 }
 0x226   : > { %v4332_v54 = vpop.eup %4331  ;;  %v1047_v62 = vmul.f32 %v1015_v46, %v1015_v46  ;;  %v984_v58 = vsub.f32 1.0, %v4330_v61 }
 0x227   : > { %v575_v49 = vmul.f32 0.6931472, %v4332_v54 }
 0x228   : > { %v1079_v17 = vsub.f32 0.0, %v1047_v62  ;;  %v1016_v2 = vmax.f32 %v984_v58, 0.0 }
 0x22a   : > { %v1111_v59 = vmul.f32 %v1079_v17, %v887_v56  ;;  %v1048_v29 = vmul.f32 %v1016_v2, %v1016_v2 }
 0x22c   : > { %v1143_v36 = vmul.f32 0.25, %v1111_v59  ;;  %v1080_v9 = vsub.f32 0.0, %v1048_v29  ;;  %v792_v21 = vpop.xlane.xlu1 %791 }
 0x22d   : > { %v4334_v33 = vpop.eup %4333  ;;  %v5164_v13 = vsub.f32 %v792_v21, %v565_v32 }
 0x22e   : > { %v1112_v55 = vmul.f32 %v1080_v9, %v888_v41  ;;  %v986_v24 = vsub.f32 1.0, %v4334_v33  ;;  %v1241_v56 = vrot.slane %v1143_v36, %v5142_v37  ;;  %v1245_v40 = vrot.slane %v1143_v36, %v5145_v20  ;;  %v4336_v29 = vpop.eup %4335 }
 0x22f   : > { %v918_v10 = vmul.f32 1.442695, %v5164_v13  ;;  %v1249_v34 = vrot.slane %v1143_v36, %v5149_v52  ;;  %v1253_v51 = vrot.slane %v1143_v36, %v5152_v23  ;;  %v1257_v30 = vrot.slane %v1143_v36, %v5155_v39 }
 0x230   : > { %v1144_v38 = vmul.f32 0.25, %v1112_v55  ;;  %v1018_v25 = vmax.f32 %v986_v24, 0.0  ;;  %v801_v6 = vpop.xlane.xlu1 %800  ;;  %v1261_v42 = vrot.slane %v1143_v36, %v5158_v53  ;;  %v1265_v41 = vrot.slane %v1143_v36, %v5161_v63 }
 0x231   : > { %4341 = vpow2.f32 %v918_v10  ;;  %v5180_v47 = vsub.f32 %v801_v6, %v571_v16  ;;  %v1269_v43 = vrot.slane %v1143_v36, %v5167_v22  ;;  %v2279_v44 = vcombine.low %v1241_v56, %v1245_v40  ;;  %v4338_v40 = vpop.eup %4337 }
 0x232   : > { %v1050_v50 = vmul.f32 %v1018_v25, %v1018_v25  ;;  %v2280_v28 = vcombine.low %v1249_v34, %v1253_v51  ;;  %v2281_v7 = vcombine.low %v1257_v30, %v1261_v42  ;;  %v1273_v46 = vrot.slane %v1144_v38, %v5142_v37  ;;  %v4340_v6 = vpop.eup %4339 }
 0x233   : > { %v924_v61 = vmul.f32 1.442695, %v5180_v47  ;;  %v2282_v45 = vcombine.low %v1265_v41, %v1269_v43  ;;  %v2289_v19 = vrot.slane %v2279_v44, %v5170_v35  ;;  %v1277_v54 = vrot.slane %v1144_v38, %v5145_v20 }
 0x234   : > { %v1082_v62 = vsub.f32 0.0, %v1050_v50  ;;  %v807_v58 = vpop.xlane.xlu1 %806  ;;  %v2296_v17 = vrot.slane %v2280_v28, %v5170_v35  ;;  %v2303_v2 = vrot.slane %v2281_v7, %v5170_v35  ;;  %v1281_v32 = vrot.slane %v1144_v38, %v5149_v52 }
 0x235   : > { %4343 = vpow2.f32 %v924_v61  ;;  %v5190_v16 = vsub.f32 %v807_v58, %v575_v49  ;;  %v2310_v12 = vrot.slane %v2282_v45, %v5170_v35  ;;  %v1285_v59 = vrot.slane %v1144_v38, %v5152_v23 }
 0x236   : > { %v1114_v36 = vmul.f32 %v1082_v62, %v5134_v60  ;;  %v2311_v9 = vcombine.low %v2289_v19, %v2296_v17  ;;  %v1289_v21 = vrot.slane %v1144_v38, %v5155_v39  ;;  %v1293_v33 = vrot.slane %v1144_v38, %v5158_v53 }
 0x237   : > { %v928_v55 = vmul.f32 1.442695, %v5190_v16  ;;  %v2312_v24 = vcombine.low %v2303_v2, %v2310_v12  ;;  %v1297_v56 = vrot.slane %v1144_v38, %v5161_v63  ;;  %v1301_v49 = vrot.slane %v1144_v38, %v5167_v22 }
 0x238   : > { %v1146_v10 = vmul.f32 0.25, %v1114_v36  ;;  %v2319_v34 = vrot.slane %v2311_v9, %v5170_v35  ;;  %v2328_v51 = vcombine.low %v1273_v46, %v1277_v54  ;;  %v2329_v30 = vcombine.low %v1281_v32, %v1285_v59  ;;  %v843_v41 = vpop.xlane.xlu1 %842 }
 0x239   : > { %4345 = vpow2.f32 %v928_v55  ;;  %v2326_v60 = vrot.slane %v2312_v24, %v5170_v35  ;;  %v2330_v25 = vcombine.low %v1289_v21, %v1293_v33  ;;  %v599_v42 = vmul.f32 0.6931472, %v4336_v29 }
 0x23a   : > { %v2331_v43 = vcombine.low %v1297_v56, %v1301_v49  ;;  %v2338_v44 = vrot.slane %v2328_v51, %v5170_v35  ;;  %v2345_v50 = vrot.slane %v2329_v30, %v5170_v35  ;;  %v1337_v7 = vrot.slane %v1146_v10, %v5142_v37 }
 0x23b   : > { %v2327_v28 = vcombine.low %v2319_v34, %v2326_v60  ;;  %v2352_v38 = vrot.slane %v2330_v25, %v5170_v35  ;;  %v1341_v46 = vrot.slane %v1146_v10, %v5145_v20  ;;  %v1345_v19 = vrot.slane %v1146_v10, %v5149_v52 }
 0x23c   : > { %v2359_v61 = vrot.slane %v2331_v43, %v5170_v35  ;;  %v2360_v45 = vcombine.low %v2338_v44, %v2345_v50  ;;  %v1349_v54 = vrot.slane %v1146_v10, %v5152_v23  ;;  %v5210_v62 = vsub.f32 %v843_v41, %v599_v42  ;;  %v849_v33 = vpop.xlane.xlu1 %848 }
 0x23d   : > { %3802 = vperm.xlu1 %4252, %v2327_v28   ;;  %v1353_v58 = vrot.slane %v1146_v10, %v5155_v39  ;;  %v1357_v17 = vrot.slane %v1146_v10, %v5158_v53  ;;  %v1361_v59 = vrot.slane %v1146_v10, %v5161_v63  ;;  %v1365_v29 = vrot.slane %v1146_v10, %v5167_v22 }
 0x23e   : > { %v4342_v2 = vpop.eup %4341  ;;  %v2361_v32 = vcombine.low %v2352_v38, %v2359_v61  ;;  %v2368_v12 = vrot.slane %v2360_v45, %v5170_v35  ;;  %v2426_v9 = vcombine.low %v1337_v7, %v1341_v46  ;;  %v2427_v21 = vcombine.low %v1345_v19, %v1349_v54 }
 0x23f   : > { %v982_v36 = vsub.f32 1.0, %v4342_v2  ;;  %v2428_v24 = vcombine.low %v1353_v58, %v1357_v17  ;;  %v2429_v56 = vcombine.low %v1361_v59, %v1365_v29  ;;  %v952_v34 = vmul.f32 1.442695, %v5210_v62 }
 0x240   : > { %v2375_v55 = vrot.slane %v2361_v32, %v5170_v35  ;;  %v603_v51 = vmul.f32 0.6931472, %v4338_v40  ;;  %v2436_v30 = vrot.slane %v2426_v9, %v5170_v35  ;;  %v2443_v42 = vrot.slane %v2427_v21, %v5170_v35  ;;  %v855_v45 = vpop.xlane.xlu1 %854 }
 0x241   : > { %v1014_v49 = vmax.f32 %v982_v36, 0.0  ;;  %v2450_v10 = vrot.slane %v2428_v24, %v5170_v35  ;;  %v2457_v41 = vrot.slane %v2429_v56, %v5170_v35  ;;  %4347 = vlog2.f32 %v4947_v4 }
 0x242   : > { %v4344_v60 = vpop.eup %4343  ;;  %v2376_v25 = vcombine.low %v2368_v12, %v2375_v55  ;;  %v5224_v50 = vsub.f32 %v849_v33, %v603_v51  ;;  %4349 = vlog2.f32 %v4950_v11  ;;  %v2458_v40 = vcombine.low %v2436_v30, %v2443_v42 }
 0x243   : > { %v1046_v43 = vmul.f32 %v1014_v49, %v1014_v49  ;;  %v985_v44 = vsub.f32 1.0, %v4344_v60  ;;  %v2459_v28 = vcombine.low %v2450_v10, %v2457_v41  ;;  %4351 = vpow2.f32 %v952_v34 }
 0x244   : > { %3805 = vperm.xlu1 %4252, %v2376_v25   ;;  %4353 = vlog2.f32 %v4952_v14  ;;  %v607_v61 = vmul.f32 0.6931472, %v4340_v6  ;;  %v2466_v19 = vrot.slane %v2458_v40, %v5170_v35  ;;  %v956_v11 = vmul.f32 1.442695, %v5224_v50 }
 0x245   : > { %v1078_v38 = vsub.f32 0.0, %v1046_v43  ;;  %v1017_v7 = vmax.f32 %v985_v44, 0.0  ;;  %v2473_v4 = vrot.slane %v2459_v28, %v5170_v35  ;;  %4355 = vlog2.f32 %v4955_v18 }
 0x246   : > { %v4346_v46 = vpop.eup %4345  ;;  %v5233_v29 = vsub.f32 %v855_v45, %v607_v61  ;;  %4357 = vlog2.f32 %v4957_v0 }
 0x247   : > { %v1110_v54 = vmul.f32 %v1078_v38, %v5164_v13  ;;  %v1049_v58 = vmul.f32 %v1017_v7, %v1017_v7  ;;  %v987_v17 = vsub.f32 1.0, %v4346_v46  ;;  %v2474_v2 = vcombine.low %v2466_v19, %v2473_v4 }
 0x248   : > { %4359 = vpow2.f32 %v956_v11  ;;  %v960_v24 = vmul.f32 1.442695, %v5233_v29 }
 0x249   : > { %v1142_v32 = vmul.f32 0.25, %v1110_v54  ;;  %v1081_v12 = vsub.f32 0.0, %v1049_v58  ;;  %v1019_v59 = vmax.f32 %v987_v17, 0.0  ;;  %3811 = vperm.xlu1 %4252, %v2474_v2   ;;  %4361 = vlog2.f32 %v4960_v1 }
 0x24a   : > { %4363 = vlog2.f32 %v4962_v26 }
 0x24b   : > { %v1113_v14 = vmul.f32 %v1081_v12, %v5180_v47  ;;  %v1051_v6 = vmul.f32 %v1019_v59, %v1019_v59  ;;  %v1209_v13 = vrot.slane %v1142_v32, %v5142_v37  ;;  %v1213_v36 = vrot.slane %v1142_v32, %v5145_v20 }
 0x24c   : > { %v1217_v9 = vrot.slane %v1142_v32, %v5149_v52  ;;  %v1221_v18 = vrot.slane %v1142_v32, %v5152_v23  ;;  %v1225_v21 = vrot.slane %v1142_v32, %v5155_v39  ;;  %v1229_v0 = vrot.slane %v1142_v32, %v5158_v53 }
 0x24d   : > { %v1145_v33 = vmul.f32 0.25, %v1113_v14  ;;  %v1083_v55 = vsub.f32 0.0, %v1051_v6  ;;  %v1233_v47 = vrot.slane %v1142_v32, %v5161_v63  ;;  %v1237_v56 = vrot.slane %v1142_v32, %v5167_v22 }
 0x24e   : > { %v2230_v49 = vcombine.low %v1209_v13, %v1213_v36  ;;  %v2231_v34 = vcombine.low %v1217_v9, %v1221_v18  ;;  %v2232_v30 = vcombine.low %v1225_v21, %v1229_v0  ;;  %v5248_v60 = vpop.eup %4347  ;;  %4365 = vpow2.f32 %v960_v24 }
 0x24f   : > { %v1115_v51 = vmul.f32 %v1083_v55, %v5190_v16  ;;  %v2233_v25 = vcombine.low %v1233_v47, %v1237_v56  ;;  %v5253_v41 = vpop.eup %4349  ;;  %v1305_v44 = vrot.slane %v1145_v33, %v5142_v37  ;;  %v1309_v28 = vrot.slane %v1145_v33, %v5145_v20  ;;  %v6283_v47 = vld [vmem:[#allocation5_spill] sm:$0xff] }
 0x250   : > { %v2240_v42 = vrot.slane %v2230_v49, %v5170_v35  ;;  %v2247_v10 = vrot.slane %v2231_v34, %v5170_v35  ;;  %v2254_v43 = vrot.slane %v2232_v30, %v5170_v35  ;;  %v4352_v1 = vpop.eup %4351  ;;  %v1313_v26 = vrot.slane %v1145_v33, %v5149_v52 }
 0x251   : > { %v2261_v16 = vrot.slane %v2233_v25, %v5170_v35  ;;  %v5260_v38 = vpop.eup %4353  ;;  %4367 = vlog2.f32 %v4965_v5  ;;  %v1147_v7 = vmul.f32 0.25, %v1115_v51  ;;  %v1317_v46 = vrot.slane %v1145_v33, %v5152_v23 }
 0x252   : > { %v2262_v40 = vcombine.low %v2240_v42, %v2247_v10  ;;  %v1321_v19 = vrot.slane %v1145_v33, %v5155_v39  ;;  %v1325_v4 = vrot.slane %v1145_v33, %v5158_v53  ;;  %v5267_v54 = vpop.eup %4355  ;;  %4369 = vlog2.f32 %v4967_v31 }
 0x253   : > { %v2263_v61 = vcombine.low %v2254_v43, %v2261_v16  ;;  %v999_v58 = vsub.f32 1.0, %v4352_v1  ;;  %v1329_v17 = vrot.slane %v1145_v33, %v5161_v63  ;;  %v1333_v5 = vrot.slane %v1145_v33, %v5167_v22  ;;  %v5273_v12 = vpop.eup %4357  ;;  %v6284_v43 = vld [vmem:[#allocation6_spill] sm:$0xff] }
 0x254   : > { %v2270_v45 = vrot.slane %v2262_v40, %v5170_v35  ;;  %v2377_v2 = vcombine.low %v1305_v44, %v1309_v28  ;;  %v2378_v32 = vcombine.low %v1313_v26, %v1317_v46  ;;  %4371 = vlog2.f32 %v4970_v57 }
 0x255   : > { %v2277_v11 = vrot.slane %v2263_v61, %v5170_v35  ;;  %v2379_v59 = vcombine.low %v1321_v19, %v1325_v4  ;;  %v1369_v14 = vrot.slane %v1147_v7, %v5142_v37  ;;  %v4360_v6 = vpop.eup %4359  ;;  %v2380_v36 = vcombine.low %v1329_v17, %v1333_v5  ;;  %v6287_v5 = vld [vmem:[#allocation9_spill] sm:$0xff] }
 0x256   : > { %v2387_v31 = vrot.slane %v2377_v2, %v5170_v35  ;;  %v2394_v9 = vrot.slane %v2378_v32, %v5170_v35  ;;  %4373 = vlog2.f32 %v4972_v8  ;;  %v1031_v18 = vmax.f32 %v999_v58, 0.0  ;;  %v4362_v34 = vpop.eup %4361  ;;  %v6286_v58 = vld [vmem:[#allocation8_spill] sm:$0xff] }
 0x257   : > { %v2278_v13 = vcombine.low %v2270_v45, %v2277_v11  ;;  %v2401_v21 = vrot.slane %v2379_v59, %v5170_v35  ;;  %v1373_v33 = vrot.slane %v1147_v7, %v5145_v20  ;;  %v2408_v57 = vrot.slane %v2380_v36, %v5170_v35  ;;  %v4364_v10 = vpop.eup %4363  ;;  %v6285_v45 = vld [vmem:[#allocation7_spill] sm:$0xff] }
 0x258   : > { %v2409_v55 = vcombine.low %v2387_v31, %v2394_v9  ;;  %v1377_v24 = vrot.slane %v1147_v7, %v5149_v52  ;;  %v1381_v0 = vrot.slane %v1147_v7, %v5152_v23  ;;  %4375 = vlog2.f32 %v6283_v47  ;;  %v6289_v31 = vld [vmem:[#allocation11_spill] sm:$0xff] }
 0x259   : > { %3799 = vperm.xlu0 %4251, %v2278_v13   ;;  %v1385_v56 = vrot.slane %v1147_v7, %v5155_v39  ;;  %v1389_v49 = vrot.slane %v1147_v7, %v5158_v53  ;;  %v1393_v8 = vrot.slane %v1147_v7, %v5161_v63  ;;  %v2410_v51 = vcombine.low %v2401_v21, %v2408_v57  ;;  %v6290_v21 = vld [vmem:[#allocation12_spill] sm:$0xff]  ;;  %v6291_v57 = vld [vmem:[#allocation13_spill] sm:$0xff] }
 0x25a   : > { %v2417_v30 = vrot.slane %v2409_v55, %v5170_v35  ;;  %v1397_v25 = vrot.slane %v1147_v7, %v5167_v22  ;;  %v2475_v42 = vcombine.low %v1369_v14, %v1373_v33  ;;  %4377 = vlog2.f32 %v6284_v43  ;;  %v6288_v14 = vld [vmem:[#allocation10_spill] sm:$0xff] }
 0x25b   : > { %v1001_v44 = vsub.f32 1.0, %v4360_v6  ;;  %v2476_v1 = vcombine.low %v1377_v24, %v1381_v0  ;;  %v2477_v16 = vcombine.low %v1385_v56, %v1389_v49  ;;  %v4366_v40 = vpop.eup %4365  ;;  %v1063_v28 = vmul.f32 %v1031_v18, %v1031_v18 }
 0x25c   : > { %v2424_v26 = vrot.slane %v2410_v51, %v5170_v35  ;;  %v2478_v46 = vcombine.low %v1393_v8, %v1397_v25  ;;  %v2485_v61 = vrot.slane %v2475_v42, %v5170_v35  ;;  %4379 = vlog2.f32 %v6285_v45 }
 0x25d   : > { %v2492_v19 = vrot.slane %v2476_v1, %v5170_v35  ;;  %v2499_v7 = vrot.slane %v2477_v16, %v5170_v35  ;;  %4381 = vlog2.f32 %v6286_v58  ;;  %v1033_v2 = vmax.f32 %v1001_v44, 0.0 }
 0x25e   : > { %v4368_v4 = vpop.eup %4367  ;;  %v2425_v17 = vcombine.low %v2417_v30, %v2424_v26  ;;  %v2506_v11 = vrot.slane %v2478_v46, %v5170_v35  ;;  %4383 = vlog2.f32 %v6287_v5  ;;  %v1095_v6 = vsub.f32 0.0, %v1063_v28  ;;  %v6292_v5 = vld [vmem:[#allocation14_spill] sm:$0xff] }
 0x25f   : > { %v2507_v32 = vcombine.low %v2485_v61, %v2492_v19  ;;  %v4370_v59 = vpop.eup %4369  ;;  %4385 = vlog2.f32 %v6288_v14  ;;  %v1003_v13 = vsub.f32 1.0, %v4366_v40  ;;  %v1065_v55 = vmul.f32 %v1033_v2, %v1033_v2 }
 0x260   : > { %3808 = vperm.xlu0 %4251, %v2425_v17   ;;  %v2508_v36 = vcombine.low %v2499_v7, %v2506_v11  ;;  %4387 = vlog2.f32 %v6289_v31  ;;  %v1127_v0 = vmul.f32 %v1095_v6, %v5210_v62  ;;  %v5308_v42 = vmul.f32 0.6931472, %v5248_v60 }
 0x261   : > { %v2515_v9 = vrot.slane %v2507_v32, %v5170_v35  ;;  %v4372_v18 = vpop.eup %4371  ;;  %4389 = vlog2.f32 %v6290_v21  ;;  %v1035_v47 = vmax.f32 %v1003_v13, 0.0  ;;  %v1097_v8 = vsub.f32 0.0, %v1065_v55 }
 0x262   : > { %v2522_v33 = vrot.slane %v2508_v36, %v5170_v35  ;;  %4391 = vlog2.f32 %v6291_v57  ;;  %v1159_v30 = vmul.f32 0.25, %v1127_v0  ;;  %v5311_v44 = vmul.f32 0.6931472, %v5253_v41 }
 0x263   : > { %v4374_v24 = vpop.eup %4373  ;;  %v1067_v25 = vmul.f32 %v1035_v47, %v1035_v47  ;;  %v5314_v1 = vmul.f32 0.6931472, %v5260_v38  ;;  %v5317_v40 = vmul.f32 0.6931472, %v5267_v54  ;;  %v5320_v28 = vmul.f32 0.6931472, %v5273_v12 }
 0x264   : > { %v2523_v56 = vcombine.low %v2515_v9, %v2522_v33  ;;  %v597_v43 = vmul.f32 0.6931472, %v4374_v24  ;;  %v5322_v26 = vmul.f32 0.6931472, %v4362_v34  ;;  %v1129_v60 = vmul.f32 %v1097_v8, %v5224_v50  ;;  %v6293_v47 = vld [vmem:[#allocation16_spill] sm:$0xff] }
 0x265   : > { %v4376_v49 = vpop.eup %4375  ;;  %v5327_v41 = vmul.f32 0.6931472, %v4364_v10  ;;  %v5329_v45 = vmul.f32 0.6931472, %v4368_v4  ;;  %v1099_v19 = vsub.f32 0.0, %v1067_v25  ;;  %v1753_v54 = vrot.slane %v1159_v30, %v5142_v37 }
 0x266   : > { %3814 = vperm.xlu0 %4251, %v2523_v56   ;;  %v601_v7 = vmul.f32 0.6931472, %v4376_v49  ;;  %v5331_v58 = vmul.f32 0.6931472, %v4370_v59  ;;  %v1757_v17 = vrot.slane %v1159_v30, %v5145_v20  ;;  %v1761_v50 = vrot.slane %v1159_v30, %v5149_v52 }
 0x267   : > { %v4378_v51 = vpop.eup %4377  ;;  %v1765_v11 = vrot.slane %v1159_v30, %v5152_v23  ;;  %4393 = vlog2.f32 %v6292_v5  ;;  %v5339_v14 = vmul.f32 0.6931472, %v4372_v18  ;;  %v5341_v6 = vmul.f32 0.25, %v1129_v60 }
 0x268   : > { %v605_v2 = vmul.f32 0.6931472, %v4378_v51  ;;  %v1131_v9 = vmul.f32 %v1099_v19, %v5233_v29  ;;  %v1769_v21 = vrot.slane %v1159_v30, %v5155_v39  ;;  %v1773_v33 = vrot.slane %v1159_v30, %v5158_v53 }
 0x269   : > { %v4380_v16 = vpop.eup %4379  ;;  %v1777_v57 = vrot.slane %v1159_v30, %v5161_v63  ;;  %v1781_v18 = vrot.slane %v1159_v30, %v5167_v22  ;;  %v5351_v24 = vcombine.low %v1753_v54, %v1757_v17  ;;  %v5353_v0 = vcombine.low %v1761_v50, %v1765_v11 }
 0x26a   : > { %v4382_v46 = vpop.eup %4381  ;;  %v609_v32 = vmul.f32 0.6931472, %v4380_v16  ;;  %v1163_v30 = vmul.f32 0.25, %v1131_v9  ;;  %v5367_v16 = vcombine.low %v1769_v21, %v1773_v33  ;;  %v1833_v17 = vrot.slane %v5341_v6, %v5155_v39 }
 0x26b   : > { %v4384_v38 = vpop.eup %4383  ;;  %v611_v36 = vmul.f32 0.6931472, %v4382_v46  ;;  %v5372_v60 = vcombine.low %v1777_v57, %v1781_v18  ;;  %v1841_v5 = vrot.slane %v5341_v6, %v5161_v63 }
 0x26c   : > { %v840_v62 = vpop.xlane.xlu0 %839  ;;  %v4386_v12 = vpop.eup %4385  ;;  %v613_v49 = vmul.f32 0.6931472, %v4384_v38  ;;  %v1893_v9 = vrot.slane %v1163_v30, %v5152_v23  ;;  %v1897_v57 = vrot.slane %v1163_v30, %v5155_v39  ;;  %v1909_v18 = vrot.slane %v1163_v30, %v5167_v22 }
 0x26d   : > { %v5325_v61 = vsub.f32 %v840_v62, %v597_v43  ;;  %v4388_v10 = vpop.eup %4387  ;;  %v5356_v8 = vmul.f32 0.6931472, %v4386_v12  ;;  %v1817_v62 = vrot.slane %v5341_v6, %v5142_v37  ;;  %v1825_v12 = vrot.slane %v5341_v6, %v5149_v52 }
 0x26e   : > { %v4390_v59 = vpop.eup %4389  ;;  %v5358_v29 = vmul.f32 0.6931472, %v4388_v10  ;;  %v1837_v10 = vrot.slane %v5341_v6, %v5158_v53 }
 0x26f   : > { %v950_v34 = vmul.f32 1.442695, %v5325_v61  ;;  %v4392_v31 = vpop.eup %4391  ;;  %v5362_v25 = vmul.f32 0.6931472, %v4390_v59  ;;  %v1885_v59 = vrot.slane %v1163_v30, %v5145_v20 }
 0x270   : > { %v846_v4 = vpop.xlane.xlu0 %845  ;;  %v5364_v43 = vmul.f32 0.6931472, %v4392_v31  ;;  %v3163_v48 = vcombine.low %v1833_v17, %v1837_v10 }
 0x271   : > { %4395 = vpow2.f32 %v950_v34  ;;  %v5343_v13 = vsub.f32 %v846_v4, %v601_v7  ;;  %v1829_v34 = vrot.slane %v5341_v6, %v5152_v23  ;;  %v1845_v4 = vrot.slane %v5341_v6, %v5167_v22 }
 0x272   : > { %4397 = vlog2.f32 %v6293_v47 }
 0x273   : > { %v954_v55 = vmul.f32 1.442695, %v5343_v13  ;;  %v3162_v19 = vcombine.low %v1825_v12, %v1829_v34  ;;  %v3164_v22 = vcombine.low %v1841_v5, %v1845_v4  ;;  %v3094_v12 = vrot.slane %v5372_v60, %v5170_v35 }
 0x274   : > { %v852_v56 = vpop.xlane.xlu0 %851  ;;  %v4394_v47 = vpop.eup %4393 }
 0x275   : > { %4399 = vpow2.f32 %v954_v55  ;;  %v5360_v51 = vsub.f32 %v852_v56, %v605_v2  ;;  %v1881_v2 = vrot.slane %v1163_v30, %v5142_v37  ;;  %v1901_v55 = vrot.slane %v1163_v30, %v5158_v53 }
 0x276   : > { %4401 = vlog2.f32 %v5047_v27  ;;  %v1821_v27 = vrot.slane %v5341_v6, %v5145_v20  ;;  %v1905_v6 = vrot.slane %v1163_v30, %v5161_v63  ;;  %v3178_v17 = vrot.slane %v3162_v19, %v5170_v35 }
 0x277   : > { %v958_v46 = vmul.f32 1.442695, %v5360_v51 }
 0x278   : > { %v858_v7 = vpop.xlane.xlu1 %857  ;;  %v810_v54 = vpop.xlane.xlu0 %809  ;;  %v3161_v38 = vcombine.low %v1817_v62, %v1821_v27 }
 0x279   : > { %v5386_v50 = vsub.f32 %v858_v7, %v609_v32  ;;  %v5389_v11 = vsub.f32 %v810_v54, %v5308_v42  ;;  %4403 = vpow2.f32 %v958_v46  ;;  %v1889_v42 = vrot.slane %v1163_v30, %v5149_v52 }
 0x27a   : > { %v3087_v7 = vrot.slane %v5367_v16, %v5170_v35  ;;  %v3171_v34 = vrot.slane %v3161_v38, %v5170_v35 }
 0x27b   : > { %v962_v32 = vmul.f32 1.442695, %v5386_v50  ;;  %v930_v31 = vmul.f32 1.442695, %v5389_v11  ;;  %v3260_v63 = vcombine.low %v1889_v42, %v1893_v9  ;;  %v5439_v9 = vmul.f32 0.6931472, %v4394_v47 }
 0x27c   : > { %v861_v21 = vpop.xlane.xlu1 %860  ;;  %v813_v33 = vpop.xlane.xlu0 %812 }
 0x27d   : > { %4405 = vpow2.f32 %v962_v32  ;;  %v5407_v56 = vsub.f32 %v861_v21, %v611_v36  ;;  %v5410_v46 = vsub.f32 %v813_v33, %v5311_v44  ;;  %v3259_v21 = vcombine.low %v1881_v2, %v1885_v59 }
 0x27e   : > { %v4396_v54 = vpop.eup %4395  ;;  %4407 = vpow2.f32 %v930_v31  ;;  %v3261_v44 = vcombine.low %v1897_v57, %v1901_v55  ;;  %v3262_v33 = vcombine.low %v1905_v6, %v1909_v18  ;;  %v3192_v2 = vrot.slane %v3164_v22, %v5170_v35 }
 0x27f   : > { %v998_v3 = vsub.f32 1.0, %v4396_v54  ;;  %v964_v15 = vmul.f32 1.442695, %v5407_v56  ;;  %v932_v30 = vmul.f32 1.442695, %v5410_v46  ;;  %v4398_v53 = vpop.eup %4397  ;;  %v3269_v59 = vrot.slane %v3259_v21, %v5170_v35 }
 0x280   : > { %v864_v32 = vpop.xlane.xlu1 %863  ;;  %v816_v36 = vpop.xlane.xlu0 %815  ;;  %v3276_v60 = vrot.slane %v3260_v63, %v5170_v35  ;;  %v3283_v38 = vrot.slane %v3261_v44, %v5170_v35  ;;  %v3290_v42 = vrot.slane %v3262_v33, %v5170_v35  ;;  %v5441_v22 = vmul.f32 0.6931472, %v4398_v53 }
 0x281   : > { %v1030_v39 = vmax.f32 %v998_v3, 0.0  ;;  %4409 = vpow2.f32 %v964_v15  ;;  %v5416_v16 = vsub.f32 %v864_v32, %v613_v49  ;;  %v5419_v62 = vsub.f32 %v816_v36, %v5314_v1 }
 0x282   : > { %v4400_v27 = vpop.eup %4399  ;;  %4411 = vpow2.f32 %v932_v30  ;;  %v3185_v3 = vrot.slane %v3163_v48, %v5170_v35  ;;  %v3096_v18 = vcombine.low %v3087_v7, %v3094_v12  ;;  %v3193_v53 = vcombine.low %v3171_v34, %v3178_v17 }
 0x283   : > { %v4402_v10 = vpop.eup %4401  ;;  %v1000_v5 = vsub.f32 1.0, %v4400_v27  ;;  %v966_v4 = vmul.f32 1.442695, %v5416_v16  ;;  %v934_v15 = vmul.f32 1.442695, %v5419_v62  ;;  %v1062_v31 = vmul.f32 %v1030_v39, %v1030_v39 }
 0x284   : > { %v867_v49 = vpop.xlane.xlu1 %866  ;;  %v819_v1 = vpop.xlane.xlu0 %818  ;;  %v6294_v39 = vrot.slane %v5353_v0, %v5170_v35  ;;  %v5451_v47 = vmul.f32 0.6931472, %v4402_v10  ;;  %v3194_v32 = vcombine.low %v3185_v3, %v3192_v2  ;;  %v3291_v21 = vcombine.low %v3269_v59, %v3276_v60 }
 0x285   : > { %4413 = vpow2.f32 %v966_v4  ;;  %v5433_v19 = vsub.f32 %v867_v49, %v5356_v8  ;;  %v5437_v48 = vsub.f32 %v819_v1, %v5317_v40  ;;  %v1032_v55 = vmax.f32 %v1000_v5, 0.0 }
 0x286   : > { %4415 = vpow2.f32 %v934_v15  ;;  %v4404_v57 = vpop.eup %4403  ;;  %v6295_v8 = vrot.slane %v5351_v24, %v5170_v35  ;;  %v1094_v36 = vsub.f32 0.0, %v1062_v31  ;;  %v3292_v44 = vcombine.low %v3283_v38, %v3290_v42 }
 0x287   : > { %v968_v63 = vmul.f32 1.442695, %v5433_v19  ;;  %v936_v54 = vmul.f32 1.442695, %v5437_v48  ;;  %v1002_v27 = vsub.f32 1.0, %v4404_v57  ;;  %v1064_v12 = vmul.f32 %v1032_v55, %v1032_v55 }
 0x288   : > { %v3095_v6 = vcombine.low %v6295_v8, %v6294_v39  ;;  %v870_v40 = vpop.xlane.xlu1 %869  ;;  %v822_v30 = vpop.xlane.xlu0 %821  ;;  %v3110_v34 = vrot.slane %v3096_v18, %v5170_v35  ;;  %v1126_v1 = vmul.f32 %v1094_v36, %v5325_v61  ;;  %v3208_v2 = vrot.slane %v3194_v32, %v5170_v35 }
 0x289   : > { %4417 = vpow2.f32 %v968_v63  ;;  %v5454_v0 = vsub.f32 %v870_v40, %v5358_v29  ;;  %v5457_v24 = vsub.f32 %v822_v30, %v5320_v28  ;;  %v3201_v29 = vrot.slane %v3193_v53, %v5170_v35 }
 0x28a   : > { %v4406_v33 = vpop.eup %4405  ;;  %4419 = vpow2.f32 %v936_v54  ;;  %v3103_v10 = vrot.slane %v3095_v6, %v5170_v35  ;;  %v3299_v59 = vrot.slane %v3291_v21, %v5170_v35  ;;  %v1034_v38 = vmax.f32 %v1002_v27, 0.0 }
 0x28b   : > { %v4408_v7 = vpop.eup %4407  ;;  %v1004_v5 = vsub.f32 1.0, %v4406_v33  ;;  %v970_v4 = vmul.f32 1.442695, %v5454_v0  ;;  %v938_v15 = vmul.f32 1.442695, %v5457_v24  ;;  %v3306_v42 = vrot.slane %v3292_v44, %v5170_v35 }
 0x28c   : > { %v988_v17 = vsub.f32 1.0, %v4408_v7  ;;  %v873_v3 = vpop.xlane.xlu1 %872  ;;  %v825_v49 = vpop.xlane.xlu0 %824  ;;  %v1096_v55 = vsub.f32 0.0, %v1064_v12  ;;  %v5476_v40 = vmul.f32 0.25, %v1126_v1  ;;  %v5481_v53 = vcombine.low %v3103_v10, %v3110_v34 }
 0x28d   : > { %v5466_v28 = vsub.f32 %v873_v3, %v5362_v25  ;;  %4421 = vpow2.f32 %v970_v4  ;;  %v5471_v31 = vsub.f32 %v825_v49, %v5322_v26  ;;  %v1036_v63 = vmax.f32 %v1004_v5, 0.0 }
 0x28e   : > { %v4410_v60 = vpop.eup %4409  ;;  %4423 = vpow2.f32 %v938_v15  ;;  %v1020_v61 = vmax.f32 %v988_v17, 0.0  ;;  %v1066_v36 = vmul.f32 %v1034_v38, %v1034_v38  ;;  %v5486_v44 = vcombine.low %v3201_v29, %v3208_v2 }
 0x28f   : > { %v4412_v57 = vpop.eup %4411  ;;  %v1005_v39 = vsub.f32 1.0, %v4410_v60  ;;  %v972_v8 = vmul.f32 1.442695, %v5466_v28  ;;  %v940_v6 = vmul.f32 1.442695, %v5471_v31  ;;  %v1128_v27 = vmul.f32 %v1096_v55, %v5343_v13 }
 0x290   : > { %v989_v25 = vsub.f32 1.0, %v4412_v57  ;;  %v876_v18 = vpop.xlane.xlu1 %875  ;;  %v828_v54 = vpop.xlane.xlu0 %827  ;;  %v1068_v7 = vmul.f32 %v1036_v63, %v1036_v63  ;;  %v1052_v5 = vmul.f32 %v1020_v61, %v1020_v61  ;;  %v5490_v34 = vcombine.low %v3299_v59, %v3306_v42 }
 0x291   : > { %v1037_v30 = vmax.f32 %v1005_v39, 0.0  ;;  %v5479_v26 = vsub.f32 %v876_v18, %v5364_v43  ;;  %4425 = vpow2.f32 %v972_v8  ;;  %v5484_v21 = vsub.f32 %v828_v54, %v5327_v41 }
 0x292   : > { %v4414_v32 = vpop.eup %4413  ;;  %4427 = vpow2.f32 %v940_v6  ;;  %v1021_v17 = vmax.f32 %v989_v25, 0.0  ;;  %v1098_v29 = vsub.f32 0.0, %v1066_v36  ;;  %v5497_v38 = vmul.f32 0.25, %v1128_v27 }
 0x293   : > { %v4416_v33 = vpop.eup %4415  ;;  %v1006_v12 = vsub.f32 1.0, %v4414_v32  ;;  %v974_v43 = vmul.f32 1.442695, %v5479_v26  ;;  %v1069_v4 = vmul.f32 %v1037_v30, %v1037_v30  ;;  %v942_v41 = vmul.f32 1.442695, %v5484_v21 }
 0x294   : > { %v879_v10 = vpop.xlane.xlu1 %878  ;;  %v990_v15 = vsub.f32 1.0, %v4416_v33  ;;  %v831_v1 = vpop.xlane.xlu0 %830  ;;  %v1100_v59 = vsub.f32 0.0, %v1068_v7  ;;  %v1084_v57 = vsub.f32 0.0, %v1052_v5  ;;  %v1053_v55 = vmul.f32 %v1021_v17, %v1021_v17 }
 0x295   : > { %v1038_v13 = vmax.f32 %v1006_v12, 0.0  ;;  %4429 = vpow2.f32 %v974_v43  ;;  %v5500_v39 = vsub.f32 %v879_v10, %v5439_v9  ;;  %v1101_v25 = vsub.f32 0.0, %v1069_v4 }
 0x296   : > { %v4418_v49 = vpop.eup %4417  ;;  %4431 = vpow2.f32 %v942_v41  ;;  %v1022_v8 = vmax.f32 %v990_v15, 0.0  ;;  %v5503_v6 = vsub.f32 %v831_v1, %v5329_v45  ;;  %v1130_v54 = vmul.f32 %v1098_v29, %v5360_v51 }
 0x297   : > { %v4420_v60 = vpop.eup %4419  ;;  %v1007_v42 = vsub.f32 1.0, %v4418_v49  ;;  %v1070_v30 = vmul.f32 %v1038_v13, %v1038_v13  ;;  %v976_v36 = vmul.f32 1.442695, %v5500_v39  ;;  %v1132_v27 = vmul.f32 %v1100_v59, %v5386_v50 }
 0x298   : > { %v991_v63 = vsub.f32 1.0, %v4420_v60  ;;  %v882_v61 = vpop.xlane.xlu1 %881  ;;  %v944_v7 = vmul.f32 1.442695, %v5503_v6  ;;  %v1116_v5 = vmul.f32 %v1084_v57, %v5389_v11  ;;  %v1085_v17 = vsub.f32 0.0, %v1053_v55  ;;  %v834_v51 = vpop.xlane.xlu0 %833 }
 0x299   : > { %v1039_v32 = vmax.f32 %v1007_v42, 0.0  ;;  %v5512_v12 = vsub.f32 %v882_v61, %v5441_v22  ;;  %4433 = vpow2.f32 %v976_v36  ;;  %v1133_v4 = vmul.f32 %v1101_v25, %v5407_v56 }
 0x29a   : > { %v4422_v33 = vpop.eup %4421  ;;  %v1023_v9 = vmax.f32 %v991_v63, 0.0  ;;  %v1054_v15 = vmul.f32 %v1022_v8, %v1022_v8  ;;  %4435 = vpow2.f32 %v944_v7  ;;  %v1102_v50 = vsub.f32 0.0, %v1070_v30 }
 0x29b   : > { %v4424_v45 = vpop.eup %4423  ;;  %v1008_v43 = vsub.f32 1.0, %v4422_v33  ;;  %v1071_v49 = vmul.f32 %v1039_v32, %v1039_v32  ;;  %v978_v13 = vmul.f32 1.442695, %v5512_v12  ;;  %v5518_v11 = vsub.f32 %v834_v51, %v5331_v58 }
 0x29c   : > { %v885_v10 = vpop.xlane.xlu1 %884  ;;  %v992_v41 = vsub.f32 1.0, %v4424_v45  ;;  %v1055_v1 = vmul.f32 %v1023_v9, %v1023_v9  ;;  %v1117_v56 = vmul.f32 %v1085_v17, %v5410_v46  ;;  %v5524_v63 = vmul.f32 0.25, %v1130_v54  ;;  %v837_v45 = vpop.xlane.xlu0 %836 }
 0x29d   : > { %v1040_v29 = vmax.f32 %v1008_v43, 0.0  ;;  %v5521_v59 = vsub.f32 %v885_v10, %v5451_v47  ;;  %4437 = vpow2.f32 %v978_v13  ;;  %v1086_v61 = vsub.f32 0.0, %v1054_v15 }
 0x29e   : > { %v4426_v22 = vpop.eup %4425  ;;  %v1024_v60 = vmax.f32 %v992_v41, 0.0  ;;  %v946_v8 = vmul.f32 1.442695, %v5518_v11  ;;  %v5527_v30 = vmul.f32 0.25, %v1132_v27  ;;  %v1134_v58 = vmul.f32 %v1102_v50, %v5416_v16 }
 0x29f   : > { %v4428_v42 = vpop.eup %4427  ;;  %v1072_v57 = vmul.f32 %v1040_v29, %v1040_v29  ;;  %v1009_v55 = vsub.f32 1.0, %v4426_v22  ;;  %v1103_v32 = vsub.f32 0.0, %v1071_v49  ;;  %v1148_v33 = vmul.f32 0.25, %v1116_v5 }
 0x2a0   : > { %v993_v25 = vsub.f32 1.0, %v4428_v42  ;;  %v1056_v36 = vmul.f32 %v1024_v60, %v1024_v60  ;;  %v1087_v9 = vsub.f32 0.0, %v1055_v1  ;;  %v980_v46 = vmul.f32 1.442695, %v5521_v59 }
 0x2a1   : > { %v1041_v7 = vmax.f32 %v1009_v55, 0.0  ;;  %v5531_v54 = vmul.f32 0.25, %v1133_v4  ;;  %v5533_v43 = vmul.f32 0.25, %v1117_v56  ;;  %v1104_v51 = vsub.f32 0.0, %v1072_v57 }
 0x2a2   : > { %v4430_v47 = vpop.eup %4429  ;;  %v1118_v27 = vmul.f32 %v1086_v61, %v5419_v62  ;;  %v1025_v15 = vmax.f32 %v993_v25, 0.0  ;;  %4439 = vpow2.f32 %v946_v8  ;;  %v5536_v41 = vmul.f32 0.25, %v1134_v58 }
 0x2a3   : > { %v4432_v17 = vpop.eup %4431  ;;  %v1010_v10 = vsub.f32 1.0, %v4430_v47  ;;  %v1135_v5 = vmul.f32 %v1103_v32, %v5433_v19  ;;  %v1088_v50 = vsub.f32 0.0, %v1056_v36  ;;  %v5540_v49 = vsub.f32 %v837_v45, %v5339_v14  ;;  %v6297_v14 = vld [vmem:[#allocation18_spill] sm:$0xff] }
 0x2a4   : > { %v994_v16 = vsub.f32 1.0, %v4432_v17  ;;  %v1119_v4 = vmul.f32 %v1087_v9, %v5437_v48  ;;  %v1073_v29 = vmul.f32 %v1041_v7, %v1041_v7  ;;  %4441 = vpow2.f32 %v980_v46  ;;  %v6299_v9 = vld [vmem:[#allocation20_spill] sm:$0xff]  ;;  %v6300_v17 = vld [vmem:[#allocation21_spill] sm:$0xff] }
 0x2a5   : > { %6296 = vst [vmem:[#allocation5_spill] sm:$0xff] %v5540_v49  ;;  %v1042_v13 = vmax.f32 %v1010_v10, 0.0  ;;  %v1136_v22 = vmul.f32 %v1104_v51, %v5454_v0  ;;  %v1401_v62 = vrot.slane %v1148_v33, %v5142_v37  ;;  %v1405_v60 = vrot.slane %v1148_v33, %v5145_v20  ;;  %v6298_v0 = vld [vmem:[#allocation19_spill] sm:$0xff] }
 0x2a6   : > { %v1026_v1 = vmax.f32 %v994_v16, 0.0  ;;  %v4434_v42 = vpop.eup %4433  ;;  %v1057_v56 = vmul.f32 %v1025_v15, %v1025_v15  ;;  %v1409_v19 = vrot.slane %v1148_v33, %v5149_v52  ;;  %v1413_v57 = vrot.slane %v1148_v33, %v5152_v23 }
 0x2a7   : > { %v1417_v55 = vrot.slane %v1148_v33, %v6297_v14  ;;  %v4436_v61 = vpop.eup %4435  ;;  %v1120_v48 = vmul.f32 %v1088_v50, %v5457_v24  ;;  %v1011_v25 = vsub.f32 1.0, %v4434_v42  ;;  %v948_v8 = vmul.f32 1.442695, %v5540_v49 }
 0x2a8   : > { %v1421_v58 = vrot.slane %v1148_v33, %v6298_v0  ;;  %v1105_v32 = vsub.f32 0.0, %v1073_v29  ;;  %v1074_v36 = vmul.f32 %v1042_v13, %v1042_v13  ;;  %v995_v47 = vsub.f32 1.0, %v4436_v61 }
 0x2a9   : > { %v1425_v7 = vrot.slane %v1148_v33, %v6299_v9  ;;  %v1058_v46 = vmul.f32 %v1026_v1, %v1026_v1  ;;  %v1043_v45 = vmax.f32 %v1011_v25, 0.0  ;;  %v1429_v51 = vrot.slane %v1148_v33, %v6300_v17 }
 0x2aa   : > { %v2524_v10 = vcombine.low %v1401_v62, %v1405_v60  ;;  %v4438_v15 = vpop.eup %4437  ;;  %v1089_v16 = vsub.f32 0.0, %v1057_v56  ;;  %v1027_v18 = vmax.f32 %v995_v47, 0.0  ;;  %v2525_v3 = vcombine.low %v1409_v19, %v1413_v57 }
 0x2ab   : > { %v2526_v24 = vcombine.low %v1417_v55, %v1421_v58  ;;  %v1075_v50 = vmul.f32 %v1043_v45, %v1043_v45  ;;  %v1012_v42 = vsub.f32 1.0, %v4438_v15  ;;  %4443 = vpow2.f32 %v948_v8 }
 0x2ac   : > { %v2527_v2 = vcombine.low %v1425_v7, %v1429_v51  ;;  %v1137_v29 = vmul.f32 %v1105_v32, %v5466_v28  ;;  %v1106_v13 = vsub.f32 0.0, %v1074_v36  ;;  %v2534_v61 = vrot.slane %v2524_v10, %v5170_v35 }
 0x2ad   : > { %v2541_v1 = vrot.slane %v2525_v3, %v5170_v35  ;;  %v1090_v25 = vsub.f32 0.0, %v1058_v46  ;;  %v1059_v49 = vmul.f32 %v1027_v18, %v1027_v18  ;;  %v2548_v33 = vrot.slane %v2526_v24, %v5170_v35 }
 0x2ae   : > { %v2555_v62 = vrot.slane %v2527_v2, %v5170_v35  ;;  %v5559_v60 = vmul.f32 0.25, %v1118_v27  ;;  %v5561_v56 = vmul.f32 0.25, %v1135_v5  ;;  %v5563_v19 = vmul.f32 0.25, %v1119_v4 }
 0x2af   : > { %v2556_v57 = vcombine.low %v2534_v61, %v2541_v1  ;;  %v4440_v55 = vpop.eup %4439  ;;  %v5565_v28 = vmul.f32 0.25, %v1136_v22  ;;  %v1107_v8 = vsub.f32 0.0, %v1075_v50  ;;  %v1044_v58 = vmax.f32 %v1012_v42, 0.0 }
 0x2b0   : > { %v2557_v32 = vcombine.low %v2548_v33, %v2555_v62  ;;  %v5567_v3 = vmul.f32 0.25, %v1120_v48  ;;  %v5569_v18 = vmul.f32 0.25, %v1137_v29  ;;  %v1121_v36 = vmul.f32 %v1089_v16, %v5471_v31 }
 0x2b1   : > { %v2564_v2 = vrot.slane %v2556_v57, %v5170_v35  ;;  %v4442_v27 = vpop.eup %4441  ;;  %v1138_v5 = vmul.f32 %v1106_v13, %v5479_v26  ;;  %v1122_v4 = vmul.f32 %v1090_v25, %v5484_v21  ;;  %v1091_v47 = vsub.f32 0.0, %v1059_v49 }
 0x2b2   : > { %v2571_v22 = vrot.slane %v2557_v32, %v5170_v35  ;;  %v996_v7 = vsub.f32 1.0, %v4440_v55  ;;  %v1433_v46 = vrot.slane %v5533_v43, %v5142_v37  ;;  %v1437_v48 = vrot.slane %v5533_v43, %v5145_v20 }
 0x2b3   : > { %v1441_v31 = vrot.slane %v5533_v43, %v5149_v52  ;;  %v1139_v45 = vmul.f32 %v1107_v8, %v5500_v39  ;;  %v5583_v51 = vmul.f32 %v1044_v58, %v1044_v58  ;;  %v1445_v21 = vrot.slane %v5533_v43, %v5152_v23 }
 0x2b4   : > { %v2572_v26 = vcombine.low %v2564_v2, %v2571_v22  ;;  %v5587_v49 = vmul.f32 0.25, %v1121_v36  ;;  %v1013_v10 = vsub.f32 1.0, %v4442_v27  ;;  %v1449_v15 = vrot.slane %v5533_v43, %v6297_v14 }
 0x2b5   : > { %v1453_v16 = vrot.slane %v5533_v43, %v6298_v0  ;;  %v5593_v24 = vmul.f32 0.25, %v1138_v5  ;;  %v1123_v50 = vmul.f32 %v1091_v47, %v5503_v6  ;;  %v1457_v39 = vrot.slane %v5533_v43, %v6299_v9 }
 0x2b6   : > { %3817 = vperm.xlu1 %4252, %v2572_v26   ;;  %v1461_v42 = vrot.slane %v5533_v43, %v6300_v17  ;;  %v5600_v29 = vmul.f32 0.25, %v1122_v4  ;;  %v1028_v13 = vmax.f32 %v996_v7, 0.0  ;;  %v2573_v61 = vcombine.low %v1433_v46, %v1437_v48 }
 0x2b7   : > { %v2574_v1 = vcombine.low %v1441_v31, %v1445_v21  ;;  %v5602_v25 = vmul.f32 0.25, %v1139_v45  ;;  %v1108_v33 = vsub.f32 0.0, %v5583_v51  ;;  %v2575_v62 = vcombine.low %v1449_v15, %v1453_v16 }
 0x2b8   : > { %v2576_v57 = vcombine.low %v1457_v39, %v1461_v42  ;;  %v5605_v55 = vpop.eup %4443  ;;  %v5607_v6 = vmax.f32 %v1013_v10, 0.0  ;;  %v2583_v8 = vrot.slane %v2573_v61, %v5170_v35  ;;  %v1465_v43 = vrot.slane %v5559_v60, %v5142_v37 }
 0x2b9   : > { %v2590_v58 = vrot.slane %v2574_v1, %v5170_v35  ;;  %v5613_v32 = vmul.f32 0.25, %v1123_v50  ;;  %v2597_v36 = vrot.slane %v2575_v62, %v5170_v35  ;;  %v1469_v27 = vrot.slane %v5559_v60, %v5145_v20 }
 0x2ba   : > { %v2604_v2 = vrot.slane %v2576_v57, %v5170_v35  ;;  %v5619_v5 = vmul.f32 %v1028_v13, %v1028_v13  ;;  %v1473_v47 = vrot.slane %v5559_v60, %v5149_v52  ;;  %v1477_v22 = vrot.slane %v5559_v60, %v5152_v23 }
 0x2bb   : > { %v2605_v4 = vcombine.low %v2583_v8, %v2590_v58  ;;  %v1481_v46 = vrot.slane %v5559_v60, %v6297_v14  ;;  %v1485_v48 = vrot.slane %v5559_v60, %v6298_v0  ;;  %v1489_v31 = vrot.slane %v5559_v60, %v6299_v9 }
 0x2bc   : > { %v2606_v7 = vcombine.low %v2597_v36, %v2604_v2  ;;  %v997_v45 = vsub.f32 1.0, %v5605_v55  ;;  %v1493_v21 = vrot.slane %v5559_v60, %v6300_v17  ;;  %v2622_v10 = vcombine.low %v1465_v43, %v1469_v27 }
 0x2bd   : > { %v2613_v26 = vrot.slane %v2605_v4, %v5170_v35  ;;  %v2623_v16 = vcombine.low %v1473_v47, %v1477_v22  ;;  %v2624_v50 = vcombine.low %v1481_v46, %v1485_v48  ;;  %v1497_v39 = vrot.slane %v5563_v19, %v5142_v37 }
 0x2be   : > { %v2620_v15 = vrot.slane %v2606_v7, %v5170_v35  ;;  %v2625_v42 = vcombine.low %v1489_v31, %v1493_v21  ;;  %v2632_v13 = vrot.slane %v2622_v10, %v5170_v35  ;;  %v1501_v61 = vrot.slane %v5563_v19, %v5145_v20 }
 0x2bf   : > { %v1505_v1 = vrot.slane %v5563_v19, %v5149_v52  ;;  %v2639_v60 = vrot.slane %v2623_v16, %v5170_v35  ;;  %v2646_v57 = vrot.slane %v2624_v50, %v5170_v35  ;;  %v1509_v8 = vrot.slane %v5563_v19, %v5152_v23 }
 0x2c0   : > { %v2621_v62 = vcombine.low %v2613_v26, %v2620_v15  ;;  %v2653_v58 = vrot.slane %v2625_v42, %v5170_v35  ;;  %v1513_v43 = vrot.slane %v5563_v19, %v6297_v14  ;;  %v1517_v36 = vrot.slane %v5563_v19, %v6298_v0 }
 0x2c1   : > { %v1521_v2 = vrot.slane %v5563_v19, %v6299_v9  ;;  %v2654_v27 = vcombine.low %v2632_v13, %v2639_v60  ;;  %v1525_v4 = vrot.slane %v5563_v19, %v6300_v17  ;;  %v2671_v47 = vcombine.low %v1497_v39, %v1501_v61 }
 0x2c2   : > { %3820 = vperm.xlu0 %4251, %v2621_v62   ;;  %v2672_v22 = vcombine.low %v1505_v1, %v1509_v8  ;;  %v2655_v7 = vcombine.low %v2646_v57, %v2653_v58  ;;  %v2673_v46 = vcombine.low %v1513_v43, %v1517_v36  ;;  %v1733_v48 = vrot.slane %v5476_v40, %v5152_v23 }
 0x2c3   : > { %v1737_v31 = vrot.slane %v5476_v40, %v6297_v14  ;;  %v2662_v26 = vrot.slane %v2654_v27, %v5170_v35  ;;  %v2674_v21 = vcombine.low %v1521_v2, %v1525_v4  ;;  %v2681_v10 = vrot.slane %v2671_v47, %v5170_v35 }
 0x2c4   : > { %v2688_v15 = vrot.slane %v2672_v22, %v5170_v35  ;;  %v2669_v16 = vrot.slane %v2655_v7, %v5170_v35  ;;  %v2695_v19 = vrot.slane %v2673_v46, %v5170_v35  ;;  %v1741_v50 = vrot.slane %v5476_v40, %v6298_v0 }
 0x2c5   : > { %v1745_v39 = vrot.slane %v5476_v40, %v6299_v9  ;;  %v2702_v42 = vrot.slane %v2674_v21, %v5170_v35  ;;  %v1749_v61 = vrot.slane %v5476_v40, %v6300_v17  ;;  %v6301_v1 = vrot.slane %v5476_v40, %v5145_v20 }
 0x2c6   : > { %v2703_v13 = vcombine.low %v2681_v10, %v2688_v15  ;;  %v6302_v62 = vrot.slane %v5476_v40, %v5142_v37  ;;  %v2670_v57 = vcombine.low %v2662_v26, %v2669_v16  ;;  %v6303_v8 = vrot.slane %v5476_v40, %v5149_v52 }
 0x2c7   : > { %v3016_v43 = vcombine.low %v1737_v31, %v1741_v50  ;;  %v1529_v36 = vrot.slane %v5567_v3, %v5142_v37  ;;  %v2704_v2 = vcombine.low %v2695_v19, %v2702_v42  ;;  %v3017_v4 = vcombine.low %v1745_v39, %v1749_v61 }
 0x2c8   : > { %v3014_v60 = vcombine.low %v6302_v62, %v6301_v1  ;;  %v3015_v58 = vcombine.low %v6303_v8, %v1733_v48  ;;  %v2711_v27 = vrot.slane %v2703_v13, %v5170_v35  ;;  %3823 = vperm.xlu1 %4252, %v2670_v57   ;;  %v1533_v46 = vrot.slane %v5567_v3, %v5145_v20 }
 0x2c9   : > { %v3038_v7 = vrot.slane %v3016_v43, %v5170_v35  ;;  %v1537_v40 = vrot.slane %v5567_v3, %v5149_v52  ;;  %v2718_v48 = vrot.slane %v2704_v2, %v5170_v35  ;;  %v3045_v31 = vrot.slane %v3017_v4, %v5170_v35 }
 0x2ca   : > { %v3024_v47 = vrot.slane %v3014_v60, %v5170_v35  ;;  %v3031_v22 = vrot.slane %v3015_v58, %v5170_v35  ;;  %v1541_v26 = vrot.slane %v5567_v3, %v5152_v23  ;;  %v1545_v21 = vrot.slane %v5567_v3, %v6297_v14 }
 0x2cb   : > { %v1549_v15 = vrot.slane %v5567_v3, %v6298_v0  ;;  %v1553_v16 = vrot.slane %v5567_v3, %v6299_v9  ;;  %v1557_v19 = vrot.slane %v5567_v3, %v6300_v17  ;;  %v2719_v50 = vcombine.low %v2711_v27, %v2718_v48 }
 0x2cc   : > { %v3046_v10 = vcombine.low %v3024_v47, %v3031_v22  ;;  %v3047_v39 = vcombine.low %v3038_v7, %v3045_v31  ;;  %v2720_v42 = vcombine.low %v1529_v36, %v1533_v46  ;;  %v2721_v13 = vcombine.low %v1537_v40, %v1541_v26 }
 0x2cd   : > { %v5706_v61 = vmul.f32 %v1108_v33, %v5512_v12  ;;  %v2722_v62 = vcombine.low %v1545_v21, %v1549_v15  ;;  %v2723_v60 = vcombine.low %v1553_v16, %v1557_v19  ;;  %3826 = vperm.xlu0 %4251, %v2719_v50   ;;  %v1785_v58 = vrot.slane %v5497_v38, %v5142_v37 }
 0x2ce   : > { %v3054_v1 = vrot.slane %v3046_v10, %v5170_v35  ;;  %v3061_v57 = vrot.slane %v3047_v39, %v5170_v35  ;;  %v2730_v8 = vrot.slane %v2720_v42, %v5170_v35  ;;  %v2737_v3 = vrot.slane %v2721_v13, %v5170_v35 }
 0x2cf   : > { %v2744_v43 = vrot.slane %v2722_v62, %v5170_v35  ;;  %v2751_v51 = vrot.slane %v2723_v60, %v5170_v35  ;;  %v1789_v12 = vrot.slane %v5497_v38, %v5145_v20  ;;  %v1793_v33 = vrot.slane %v5497_v38, %v5149_v52 }
 0x2d0   : > { %v3062_v36 = vcombine.low %v3054_v1, %v3061_v57  ;;  %v2752_v2 = vcombine.low %v2730_v8, %v2737_v3  ;;  %v1797_v27 = vrot.slane %v5497_v38, %v5152_v23  ;;  %v1801_v4 = vrot.slane %v5497_v38, %v6297_v14 }
 0x2d1   : > { %v2753_v47 = vcombine.low %v2744_v43, %v2751_v51  ;;  %v1805_v22 = vrot.slane %v5497_v38, %v6298_v0  ;;  %v1809_v7 = vrot.slane %v5497_v38, %v6299_v9  ;;  %v1813_v46 = vrot.slane %v5497_v38, %v6300_v17 }
 0x2d2   : > { %v5732_v40 = vmul.f32 %v5607_v6, %v5607_v6  ;;  %3847 = vperm.xlu0 %4251, %v3062_v36   ;;  %v2760_v48 = vrot.slane %v2752_v2, %v5170_v35  ;;  %v3112_v31 = vcombine.low %v1785_v58, %v1789_v12  ;;  %v3113_v26 = vcombine.low %v1793_v33, %v1797_v27 }
 0x2d3   : > { %v2767_v21 = vrot.slane %v2753_v47, %v5170_v35  ;;  %v3114_v10 = vcombine.low %v1801_v4, %v1805_v22  ;;  %v3115_v15 = vcombine.low %v1809_v7, %v1813_v46  ;;  %v1849_v16 = vrot.slane %v5524_v63, %v5142_v37 }
 0x2d4   : > { %v3122_v19 = vrot.slane %v3112_v31, %v5170_v35  ;;  %v3129_v38 = vrot.slane %v3113_v26, %v5170_v35  ;;  %v1853_v6 = vrot.slane %v5524_v63, %v5145_v20  ;;  %v1857_v50 = vrot.slane %v5524_v63, %v5149_v52 }
 0x2d5   : > { %v2768_v39 = vcombine.low %v2760_v48, %v2767_v21  ;;  %v3136_v42 = vrot.slane %v3114_v10, %v5170_v35  ;;  %v3143_v13 = vrot.slane %v3115_v15, %v5170_v35  ;;  %v1861_v1 = vrot.slane %v5524_v63, %v5152_v23 }
 0x2d6   : > { %v3144_v62 = vcombine.low %v3122_v19, %v3129_v38  ;;  %v1865_v60 = vrot.slane %v5524_v63, %v6297_v14  ;;  %v1869_v57 = vrot.slane %v5524_v63, %v6298_v0  ;;  %v1873_v8 = vrot.slane %v5524_v63, %v6299_v9 }
 0x2d7   : > { %3829 = vperm.xlu1 %4252, %v2768_v39   ;;  %v3145_v3 = vcombine.low %v3136_v42, %v3143_v13  ;;  %v1877_v58 = vrot.slane %v5524_v63, %v6300_v17  ;;  %v3210_v43 = vcombine.low %v1849_v16, %v1853_v6  ;;  %v3211_v51 = vcombine.low %v1857_v50, %v1861_v1 }
 0x2d8   : > { %v3152_v12 = vrot.slane %v3144_v62, %v5170_v35  ;;  %v3212_v33 = vcombine.low %v1865_v60, %v1869_v57  ;;  %v1913_v36 = vrot.slane %v5527_v30, %v5142_v37  ;;  %v1917_v2 = vrot.slane %v5527_v30, %v5145_v20 }
 0x2d9   : > { %v3159_v27 = vrot.slane %v3145_v3, %v5170_v35  ;;  %v3213_v4 = vcombine.low %v1873_v8, %v1877_v58  ;;  %v3220_v47 = vrot.slane %v3210_v43, %v5170_v35  ;;  %v3227_v22 = vrot.slane %v3211_v51, %v5170_v35 }
 0x2da   : > { %v3234_v63 = vrot.slane %v3212_v33, %v5170_v35  ;;  %v1921_v7 = vrot.slane %v5527_v30, %v5149_v52  ;;  %v1925_v46 = vrot.slane %v5527_v30, %v5152_v23  ;;  %v1929_v48 = vrot.slane %v5527_v30, %v6297_v14 }
 0x2db   : > { %v3160_v31 = vcombine.low %v3152_v12, %v3159_v27  ;;  %3850 = vperm.xlu1 %4252, %v5481_v53   ;;  %v3241_v26 = vrot.slane %v3213_v4, %v5170_v35  ;;  %v3242_v21 = vcombine.low %v3220_v47, %v3227_v22  ;;  %v1933_v10 = vrot.slane %v5527_v30, %v6298_v0 }
 0x2dc   : > { %v1937_v15 = vrot.slane %v5527_v30, %v6299_v9  ;;  %v1941_v16 = vrot.slane %v5527_v30, %v6300_v17  ;;  %v3308_v19 = vcombine.low %v1913_v36, %v1917_v2  ;;  %v3309_v38 = vcombine.low %v1921_v7, %v1925_v46 }
 0x2dd   : > { %v1092_v6 = vsub.f32 0.0, %v5619_v5  ;;  %3853 = vperm.xlu0 %4251, %v3160_v31   ;;  %v3243_v50 = vcombine.low %v3234_v63, %v3241_v26  ;;  %v3250_v53 = vrot.slane %v3242_v21, %v5170_v35  ;;  %v3310_v39 = vcombine.low %v1929_v48, %v1933_v10 }
 0x2de   : > { %v3311_v42 = vcombine.low %v1937_v15, %v1941_v16  ;;  %v3318_v13 = vrot.slane %v3308_v19, %v5170_v35  ;;  %v3325_v1 = vrot.slane %v3309_v38, %v5170_v35  ;;  %v1977_v62 = vrot.slane %v5536_v41, %v5142_v37 }
 0x2df   : > { %v3257_v60 = vrot.slane %v3243_v50, %v5170_v35  ;;  %3856 = vperm.xlu1 %4252, %v5486_v44   ;;  %v3332_v30 = vrot.slane %v3310_v39, %v5170_v35  ;;  %v1981_v57 = vrot.slane %v5536_v41, %v5145_v20  ;;  %v1985_v8 = vrot.slane %v5536_v41, %v5149_v52 }
 0x2e0   : > { %v3339_v3 = vrot.slane %v3311_v42, %v5170_v35  ;;  %v3340_v58 = vcombine.low %v3318_v13, %v3325_v1  ;;  %v1989_v43 = vrot.slane %v5536_v41, %v5152_v23  ;;  %v1993_v51 = vrot.slane %v5536_v41, %v6297_v14 }
 0x2e1   : > { %v3258_v12 = vcombine.low %v3250_v53, %v3257_v60  ;;  %v1997_v44 = vrot.slane %v5536_v41, %v6298_v0  ;;  %v2001_v33 = vrot.slane %v5536_v41, %v6299_v9  ;;  %v2005_v36 = vrot.slane %v5536_v41, %v6300_v17 }
 0x2e2   : > { %v3341_v2 = vcombine.low %v3332_v30, %v3339_v3  ;;  %v3348_v27 = vrot.slane %v3340_v58, %v5170_v35  ;;  %v3406_v4 = vcombine.low %v1977_v62, %v1981_v57  ;;  %v3407_v47 = vcombine.low %v1985_v8, %v1989_v43 }
 0x2e3   : > { %v5806_v22 = vmax.f32 %v997_v45, 0.0  ;;  %3859 = vperm.xlu0 %4251, %v3258_v12   ;;  %3862 = vperm.xlu1 %4252, %v5490_v34   ;;  %v3408_v63 = vcombine.low %v1993_v51, %v1997_v44  ;;  %v3409_v7 = vcombine.low %v2001_v33, %v2005_v36  ;;  %v1945_v46 = vrot.slane %v5531_v54, %v5142_v37 }
 0x2e4   : > { %v3355_v48 = vrot.slane %v3341_v2, %v5170_v35  ;;  %v3416_v41 = vrot.slane %v3406_v4, %v5170_v35  ;;  %v3423_v31 = vrot.slane %v3407_v47, %v5170_v35  ;;  %v1949_v26 = vrot.slane %v5531_v54, %v5145_v20 }
 0x2e5   : > { %v3430_v55 = vrot.slane %v3408_v63, %v5170_v35  ;;  %v3437_v45 = vrot.slane %v3409_v7, %v5170_v35  ;;  %v1953_v34 = vrot.slane %v5531_v54, %v5149_v52  ;;  %v1957_v21 = vrot.slane %v5531_v54, %v5152_v23 }
 0x2e6   : > { %v3356_v10 = vcombine.low %v3348_v27, %v3355_v48  ;;  %v3438_v15 = vcombine.low %v3416_v41, %v3423_v31  ;;  %v1961_v16 = vrot.slane %v5531_v54, %v6297_v14  ;;  %v1965_v19 = vrot.slane %v5531_v54, %v6298_v0 }
 0x2e7   : > { %v3439_v38 = vcombine.low %v3430_v55, %v3437_v45  ;;  %v1969_v50 = vrot.slane %v5531_v54, %v6299_v9  ;;  %v1973_v53 = vrot.slane %v5531_v54, %v6300_v17  ;;  %v3357_v39 = vcombine.low %v1945_v46, %v1949_v26 }
 0x2e8   : > { %3865 = vperm.xlu0 %4251, %v3356_v10   ;;  %v3446_v42 = vrot.slane %v3438_v15, %v5170_v35  ;;  %v3358_v13 = vcombine.low %v1953_v34, %v1957_v21  ;;  %v3359_v1 = vcombine.low %v1961_v16, %v1965_v19  ;;  %v2041_v62 = vrot.slane %v5565_v28, %v5142_v37 }
 0x2e9   : > { %v3453_v60 = vrot.slane %v3439_v38, %v5170_v35  ;;  %v3360_v30 = vcombine.low %v1969_v50, %v1973_v53  ;;  %v3367_v57 = vrot.slane %v3357_v39, %v5170_v35  ;;  %v2045_v8 = vrot.slane %v5565_v28, %v5145_v20 }
 0x2ea   : > { %v3374_v3 = vrot.slane %v3358_v13, %v5170_v35  ;;  %v3381_v54 = vrot.slane %v3359_v1, %v5170_v35  ;;  %v2049_v58 = vrot.slane %v5565_v28, %v5149_v52  ;;  %v2053_v43 = vrot.slane %v5565_v28, %v5152_v23 }
 0x2eb   : > { %v3454_v51 = vcombine.low %v3446_v42, %v3453_v60  ;;  %v3388_v12 = vrot.slane %v3360_v30, %v5170_v35  ;;  %v2057_v44 = vrot.slane %v5565_v28, %v6297_v14  ;;  %v2061_v33 = vrot.slane %v5565_v28, %v6298_v0 }
 0x2ec   : > { %v3389_v36 = vcombine.low %v3367_v57, %v3374_v3  ;;  %v2065_v2 = vrot.slane %v5565_v28, %v6299_v9  ;;  %v2069_v27 = vrot.slane %v5565_v28, %v6300_v17  ;;  %v3504_v4 = vcombine.low %v2041_v62, %v2045_v8 }
 0x2ed   : > { %3871 = vperm.xlu0 %4251, %v3454_v51   ;;  %v3390_v47 = vcombine.low %v3381_v54, %v3388_v12  ;;  %v3505_v63 = vcombine.low %v2049_v58, %v2053_v43  ;;  %v3506_v7 = vcombine.low %v2057_v44, %v2061_v33  ;;  %v2009_v46 = vrot.slane %v5561_v56, %v5142_v37 }
 0x2ee   : > { %v3397_v48 = vrot.slane %v3389_v36, %v5170_v35  ;;  %v3507_v41 = vcombine.low %v2065_v2, %v2069_v27  ;;  %v3514_v31 = vrot.slane %v3504_v4, %v5170_v35  ;;  %v2013_v26 = vrot.slane %v5561_v56, %v5145_v20 }
 0x2ef   : > { %v3404_v55 = vrot.slane %v3390_v47, %v5170_v35  ;;  %v3521_v28 = vrot.slane %v3505_v63, %v5170_v35  ;;  %v3528_v45 = vrot.slane %v3506_v7, %v5170_v35  ;;  %v2017_v34 = vrot.slane %v5561_v56, %v5149_v52 }
 0x2f0   : > { %v3535_v21 = vrot.slane %v3507_v41, %v5170_v35  ;;  %v2021_v10 = vrot.slane %v5561_v56, %v5152_v23  ;;  %v2025_v15 = vrot.slane %v5561_v56, %v6297_v14  ;;  %v2029_v16 = vrot.slane %v5561_v56, %v6298_v0 }
 0x2f1   : > { %v3405_v19 = vcombine.low %v3397_v48, %v3404_v55  ;;  %v3536_v38 = vcombine.low %v3514_v31, %v3521_v28  ;;  %v2033_v50 = vrot.slane %v5561_v56, %v6299_v9  ;;  %v2037_v53 = vrot.slane %v5561_v56, %v6300_v17 }
 0x2f2   : > { %v3537_v39 = vcombine.low %v3528_v45, %v3535_v21  ;;  %v3455_v42 = vcombine.low %v2009_v46, %v2013_v26  ;;  %v3456_v13 = vcombine.low %v2017_v34, %v2021_v10  ;;  %v3457_v1 = vcombine.low %v2025_v15, %v2029_v16 }
 0x2f3   : > { %3868 = vperm.xlu1 %4252, %v3405_v19   ;;  %v3544_v62 = vrot.slane %v3536_v38, %v5170_v35  ;;  %v3458_v60 = vcombine.low %v2033_v50, %v2037_v53  ;;  %v2073_v30 = vrot.slane %v5569_v18, %v5142_v37  ;;  %v2077_v57 = vrot.slane %v5569_v18, %v5145_v20 }
 0x2f4   : > { %v3551_v8 = vrot.slane %v3537_v39, %v5170_v35  ;;  %v3465_v3 = vrot.slane %v3455_v42, %v5170_v35  ;;  %v3472_v56 = vrot.slane %v3456_v13, %v5170_v35  ;;  %v3479_v54 = vrot.slane %v3457_v1, %v5170_v35 }
 0x2f5   : > { %v3486_v58 = vrot.slane %v3458_v60, %v5170_v35  ;;  %v2081_v43 = vrot.slane %v5569_v18, %v5149_v52  ;;  %v2085_v51 = vrot.slane %v5569_v18, %v5152_v23  ;;  %v2089_v12 = vrot.slane %v5569_v18, %v6297_v14 }
 0x2f6   : > { %v3552_v44 = vcombine.low %v3544_v62, %v3551_v8  ;;  %v3487_v33 = vcombine.low %v3465_v3, %v3472_v56  ;;  %v2093_v36 = vrot.slane %v5569_v18, %v6298_v0  ;;  %v2097_v2 = vrot.slane %v5569_v18, %v6299_v9 }
 0x2f7   : > { %v3488_v27 = vcombine.low %v3479_v54, %v3486_v58  ;;  %v2101_v4 = vrot.slane %v5569_v18, %v6300_v17  ;;  %v3553_v47 = vcombine.low %v2073_v30, %v2077_v57  ;;  %v3554_v63 = vcombine.low %v2081_v43, %v2085_v51 }
 0x2f8   : > { %3877 = vperm.xlu0 %4251, %v3552_v44   ;;  %v3495_v7 = vrot.slane %v3487_v33, %v5170_v35  ;;  %v3555_v46 = vcombine.low %v2089_v12, %v2093_v36  ;;  %v1561_v48 = vrot.slane %v5587_v49, %v5142_v37  ;;  %v1565_v41 = vrot.slane %v5587_v49, %v5145_v20 }
 0x2f9   : > { %v3502_v31 = vrot.slane %v3488_v27, %v5170_v35  ;;  %v3556_v26 = vcombine.low %v2097_v2, %v2101_v4  ;;  %v3563_v55 = vrot.slane %v3553_v47, %v5170_v35  ;;  %v3570_v28 = vrot.slane %v3554_v63, %v5170_v35 }
 0x2fa   : > { %v3577_v18 = vrot.slane %v3555_v46, %v5170_v35  ;;  %v1569_v45 = vrot.slane %v5587_v49, %v5149_v52  ;;  %v1573_v34 = vrot.slane %v5587_v49, %v5152_v23  ;;  %v1577_v21 = vrot.slane %v5587_v49, %v6297_v14 }
 0x2fb   : > { %v3503_v10 = vcombine.low %v3495_v7, %v3502_v31  ;;  %v3584_v15 = vrot.slane %v3556_v26, %v5170_v35  ;;  %v3585_v16 = vcombine.low %v3563_v55, %v3570_v28  ;;  %v1581_v19 = vrot.slane %v5587_v49, %v6298_v0 }
 0x2fc   : > { %v1585_v38 = vrot.slane %v5587_v49, %v6299_v9  ;;  %v1589_v50 = vrot.slane %v5587_v49, %v6300_v17  ;;  %v2769_v53 = vcombine.low %v1561_v48, %v1565_v41  ;;  %v2770_v39 = vcombine.low %v1569_v45, %v1573_v34 }
 0x2fd   : > { %3874 = vperm.xlu1 %4252, %v3503_v10   ;;  %v3586_v42 = vcombine.low %v3577_v18, %v3584_v15  ;;  %v3593_v13 = vrot.slane %v3585_v16, %v5170_v35  ;;  %v2771_v1 = vcombine.low %v1577_v21, %v1581_v19  ;;  %v2105_v62 = vrot.slane %v5593_v24, %v5142_v37 }
 0x2fe   : > { %v2772_v60 = vcombine.low %v1585_v38, %v1589_v50  ;;  %v2779_v30 = vrot.slane %v2769_v53, %v5170_v35  ;;  %v2786_v57 = vrot.slane %v2770_v39, %v5170_v35  ;;  %v2109_v8 = vrot.slane %v5593_v24, %v5145_v20 }
 0x2ff   : > { %v3600_v49 = vrot.slane %v3586_v42, %v5170_v35  ;;  %v2793_v3 = vrot.slane %v2771_v1, %v5170_v35  ;;  %v2113_v56 = vrot.slane %v5593_v24, %v5149_v52  ;;  %v2117_v54 = vrot.slane %v5593_v24, %v5152_v23 }
 0x300   : > { %v2800_v58 = vrot.slane %v2772_v60, %v5170_v35  ;;  %v2801_v43 = vcombine.low %v2779_v30, %v2786_v57  ;;  %v2121_v51 = vrot.slane %v5593_v24, %v6297_v14  ;;  %v2125_v12 = vrot.slane %v5593_v24, %v6298_v0 }
 0x301   : > { %v3601_v44 = vcombine.low %v3593_v13, %v3600_v49  ;;  %v2129_v33 = vrot.slane %v5593_v24, %v6299_v9  ;;  %v2133_v36 = vrot.slane %v5593_v24, %v6300_v17  ;;  %v3602_v2 = vcombine.low %v2105_v62, %v2109_v8 }
 0x302   : > { %v2802_v27 = vcombine.low %v2793_v3, %v2800_v58  ;;  %v2809_v4 = vrot.slane %v2801_v43, %v5170_v35  ;;  %v3603_v47 = vcombine.low %v2113_v56, %v2117_v54  ;;  %v3604_v63 = vcombine.low %v2121_v51, %v2125_v12 }
 0x303   : > { %3880 = vperm.xlu0 %4251, %v3601_v44   ;;  %v3605_v7 = vcombine.low %v2129_v33, %v2133_v36  ;;  %v3612_v46 = vrot.slane %v3602_v2, %v5170_v35  ;;  %v1593_v48 = vrot.slane %v5600_v29, %v5142_v37  ;;  %v1597_v41 = vrot.slane %v5600_v29, %v5145_v20 }
 0x304   : > { %v2816_v31 = vrot.slane %v2802_v27, %v5170_v35  ;;  %v3619_v24 = vrot.slane %v3603_v47, %v5170_v35  ;;  %v3626_v26 = vrot.slane %v3604_v63, %v5170_v35  ;;  %v1601_v55 = vrot.slane %v5600_v29, %v5149_v52 }
 0x305   : > { %v3633_v28 = vrot.slane %v3605_v7, %v5170_v35  ;;  %v1605_v18 = vrot.slane %v5600_v29, %v5152_v23  ;;  %v1609_v45 = vrot.slane %v5600_v29, %v6297_v14  ;;  %v1613_v34 = vrot.slane %v5600_v29, %v6298_v0 }
 0x306   : > { %v2817_v21 = vcombine.low %v2809_v4, %v2816_v31  ;;  %v3634_v10 = vcombine.low %v3612_v46, %v3619_v24  ;;  %v1617_v15 = vrot.slane %v5600_v29, %v6299_v9  ;;  %v1621_v16 = vrot.slane %v5600_v29, %v6300_v17 }
 0x307   : > { %v3635_v19 = vcombine.low %v3626_v26, %v3633_v28  ;;  %v2818_v38 = vcombine.low %v1593_v48, %v1597_v41  ;;  %v2819_v50 = vcombine.low %v1601_v55, %v1605_v18  ;;  %v2820_v53 = vcombine.low %v1609_v45, %v1613_v34 }
 0x308   : > { %v5963_v39 = vmul.f32 0.25, %v5706_v61  ;;  %3832 = vperm.xlu1 %4252, %v2817_v21   ;;  %v3642_v42 = vrot.slane %v3634_v10, %v5170_v35  ;;  %v2821_v13 = vcombine.low %v1617_v15, %v1621_v16  ;;  %v2137_v1 = vrot.slane %v5602_v25, %v5142_v37 }
 0x309   : > { %v3649_v62 = vrot.slane %v3635_v19, %v5170_v35  ;;  %v2828_v60 = vrot.slane %v2818_v38, %v5170_v35  ;;  %v2835_v29 = vrot.slane %v2819_v50, %v5170_v35  ;;  %v2842_v30 = vrot.slane %v2820_v53, %v5170_v35 }
 0x30a   : > { %v1109_v57 = vsub.f32 0.0, %v5732_v40  ;;  %v2849_v61 = vrot.slane %v2821_v13, %v5170_v35  ;;  %v2141_v8 = vrot.slane %v5602_v25, %v5145_v20  ;;  %v2145_v49 = vrot.slane %v5602_v25, %v5149_v52 }
 0x30b   : > { %v3650_v3 = vcombine.low %v3642_v42, %v3649_v62  ;;  %v2850_v56 = vcombine.low %v2828_v60, %v2835_v29  ;;  %v2149_v54 = vrot.slane %v5602_v25, %v5152_v23  ;;  %v2153_v58 = vrot.slane %v5602_v25, %v6297_v14 }
 0x30c   : > { %v1124_v40 = vmul.f32 %v1092_v6, %v5518_v11  ;;  %v2851_v43 = vcombine.low %v2842_v30, %v2849_v61  ;;  %v2157_v51 = vrot.slane %v5602_v25, %v6298_v0  ;;  %v2161_v12 = vrot.slane %v5602_v25, %v6299_v9 }
 0x30d   : > { %3883 = vperm.xlu0 %4251, %v3650_v3   ;;  %v2858_v44 = vrot.slane %v2850_v56, %v5170_v35  ;;  %v2165_v33 = vrot.slane %v5602_v25, %v6300_v17  ;;  %v3651_v36 = vcombine.low %v2137_v1, %v2141_v8  ;;  %v3652_v2 = vcombine.low %v2145_v49, %v2149_v54 }
 0x30e   : > { %v2865_v27 = vrot.slane %v2851_v43, %v5170_v35  ;;  %v3653_v4 = vcombine.low %v2153_v58, %v2157_v51  ;;  %v1625_v11 = vrot.slane %v5613_v32, %v5142_v37  ;;  %v1629_v5 = vrot.slane %v5613_v32, %v5145_v20  ;;  %v6304_v43 = vld [vmem:[#allocation5_spill] sm:$0xff] }
 0x30f   : > { %v3654_v6 = vcombine.low %v2161_v12, %v2165_v33  ;;  %v3661_v47 = vrot.slane %v3651_v36, %v5170_v35  ;;  %v3668_v63 = vrot.slane %v3652_v2, %v5170_v35  ;;  %v1633_v7 = vrot.slane %v5613_v32, %v5149_v52 }
 0x310   : > { %v2866_v25 = vcombine.low %v2858_v44, %v2865_v27  ;;  %v3675_v46 = vrot.slane %v3653_v4, %v5170_v35  ;;  %v1637_v48 = vrot.slane %v5613_v32, %v5152_v23  ;;  %v1641_v41 = vrot.slane %v5613_v32, %v6297_v14 }
 0x311   : > { %v3682_v31 = vrot.slane %v3654_v6, %v5170_v35  ;;  %v3683_v24 = vcombine.low %v3661_v47, %v3668_v63  ;;  %v1645_v26 = vrot.slane %v5613_v32, %v6298_v0  ;;  %v1649_v55 = vrot.slane %v5613_v32, %v6299_v9 }
 0x312   : > { %v1061_v28 = vmul.f32 %v5806_v22, %v5806_v22  ;;  %3835 = vperm.xlu1 %4252, %v2866_v25   ;;  %v1653_v18 = vrot.slane %v5613_v32, %v6300_v17  ;;  %v2867_v45 = vcombine.low %v1625_v11, %v1629_v5  ;;  %v2868_v34 = vcombine.low %v1633_v7, %v1637_v48 }
 0x313   : > { %v3684_v21 = vcombine.low %v3675_v46, %v3682_v31  ;;  %v3691_v10 = vrot.slane %v3683_v24, %v5170_v35  ;;  %v2869_v15 = vcombine.low %v1641_v41, %v1645_v26  ;;  %v1141_v16 = vmul.f32 %v1109_v57, %v5521_v59 }
 0x314   : > { %v2870_v19 = vcombine.low %v1649_v55, %v1653_v18  ;;  %v2877_v38 = vrot.slane %v2867_v45, %v5170_v35  ;;  %v2884_v50 = vrot.slane %v2868_v34, %v5170_v35  ;;  %v1156_v53 = vmul.f32 0.25, %v1124_v40 }
 0x315   : > { %v3698_v22 = vrot.slane %v3684_v21, %v5170_v35  ;;  %v2891_v42 = vrot.slane %v2869_v15, %v5170_v35  ;;  %v2169_v32 = vrot.slane %v5963_v39, %v5142_v37  ;;  %v1093_v13 = vsub.f32 0.0, %v1061_v28 }
 0x316   : > { %v2898_v1 = vrot.slane %v2870_v19, %v5170_v35  ;;  %v2899_v62 = vcombine.low %v2877_v38, %v2884_v50  ;;  %v2173_v59 = vrot.slane %v5963_v39, %v5145_v20  ;;  %v2177_v29 = vrot.slane %v5963_v39, %v5149_v52 }
 0x317   : > { %v3699_v60 = vcombine.low %v3691_v10, %v3698_v22  ;;  %v2181_v30 = vrot.slane %v5963_v39, %v5152_v23  ;;  %v2185_v57 = vrot.slane %v5963_v39, %v6297_v14  ;;  %v1173_v61 = vmul.f32 0.25, %v1141_v16 }
 0x318   : > { %v2900_v8 = vcombine.low %v2891_v42, %v2898_v1  ;;  %v2907_v49 = vrot.slane %v2899_v62, %v5170_v35  ;;  %v2189_v3 = vrot.slane %v5963_v39, %v6298_v0  ;;  %v2193_v56 = vrot.slane %v5963_v39, %v6299_v9 }
 0x319   : > { %3886 = vperm.xlu0 %4251, %v3699_v60   ;;  %v2197_v54 = vrot.slane %v5963_v39, %v6300_v17  ;;  %v3700_v58 = vcombine.low %v2169_v32, %v2173_v59  ;;  %v3701_v40 = vcombine.low %v2177_v29, %v2181_v30  ;;  %v1125_v51 = vmul.f32 %v1093_v13, %v6304_v43 }
 0x31a   : > { %v2914_v12 = vrot.slane %v2900_v8, %v5170_v35  ;;  %v3702_v44 = vcombine.low %v2185_v57, %v2189_v3  ;;  %v1657_v33 = vrot.slane %v1156_v53, %v5142_v37  ;;  %v1661_v4 = vrot.slane %v1156_v53, %v5145_v20 }
 0x31b   : > { %v3703_v36 = vcombine.low %v2193_v56, %v2197_v54  ;;  %v3710_v2 = vrot.slane %v3700_v58, %v5170_v35  ;;  %v3717_v27 = vrot.slane %v3701_v40, %v5170_v35  ;;  %v1665_v39 = vrot.slane %v1156_v53, %v5149_v52 }
 0x31c   : > { %v2915_v11 = vcombine.low %v2907_v49, %v2914_v12  ;;  %v3724_v5 = vrot.slane %v3702_v44, %v5170_v35  ;;  %v1669_v6 = vrot.slane %v1156_v53, %v5152_v23  ;;  %v1673_v7 = vrot.slane %v1156_v53, %v6297_v14 }
 0x31d   : > { %v3731_v47 = vrot.slane %v3703_v36, %v5170_v35  ;;  %v3732_v63 = vcombine.low %v3710_v2, %v3717_v27  ;;  %v1677_v25 = vrot.slane %v1156_v53, %v6298_v0  ;;  %v1681_v46 = vrot.slane %v1156_v53, %v6299_v9 }
 0x31e   : > { %3838 = vperm.xlu1 %4252, %v2915_v11   ;;  %v1685_v48 = vrot.slane %v1156_v53, %v6300_v17  ;;  %v2916_v41 = vcombine.low %v1657_v33, %v1661_v4  ;;  %v2917_v31 = vcombine.low %v1665_v39, %v1669_v6  ;;  %v1157_v34 = vmul.f32 0.25, %v1125_v51 }
 0x31f   : > { %v3733_v24 = vcombine.low %v3724_v5, %v3731_v47  ;;  %v3740_v26 = vrot.slane %v3732_v63, %v5170_v35  ;;  %v2918_v55 = vcombine.low %v1673_v7, %v1677_v25  ;;  %v2201_v19 = vrot.slane %v1173_v61, %v5142_v37  ;;  %v3800_v25 = vpop.permute.xlu0 %3799 }
 0x320   : > { %v2919_v28 = vcombine.low %v1681_v46, %v1685_v48  ;;  %v2926_v18 = vrot.slane %v2916_v41, %v5170_v35  ;;  %v2933_v45 = vrot.slane %v2917_v31, %v5170_v35  ;;  %v2205_v38 = vrot.slane %v1173_v61, %v5145_v20  ;;  %v3803_v48 = vpop.permute.xlu1 %3802 }
 0x321   : > { %v3747_v21 = vrot.slane %v3733_v24, %v5170_v35  ;;  %v2940_v10 = vrot.slane %v2918_v55, %v5170_v35  ;;  %v2209_v53 = vrot.slane %v1173_v61, %v5149_v52  ;;  %v2213_v22 = vrot.slane %v1173_v61, %v5152_v23 }
 0x322   : > { %v2947_v15 = vrot.slane %v2919_v28, %v5170_v35  ;;  %v2948_v16 = vcombine.low %v2926_v18, %v2933_v45  ;;  %v2217_v13 = vrot.slane %v1173_v61, %v6297_v14  ;;  %v2221_v1 = vrot.slane %v1173_v61, %v6298_v0 }
 0x323   : > { %v3748_v50 = vcombine.low %v3740_v26, %v3747_v21  ;;  %v2225_v62 = vrot.slane %v1173_v61, %v6299_v9  ;;  %v2229_v59 = vrot.slane %v1173_v61, %v6300_v17  ;;  %v3749_v60 = vcombine.low %v2201_v19, %v2205_v38  ;;  %v3809_v46 = vpop.permute.xlu0 %3808 }
 0x324   : > { %v2949_v42 = vcombine.low %v2940_v10, %v2947_v15  ;;  %v2956_v32 = vrot.slane %v2948_v16, %v5170_v35  ;;  %v3750_v30 = vcombine.low %v2209_v53, %v2213_v22  ;;  %v3751_v57 = vcombine.low %v2217_v13, %v2221_v1  ;;  %v3806_v31 = vpop.permute.xlu1 %3805  ;;  %v6306_v1 = vld [vmem:[#allocation17_spill] sm:$0xff] }
 0x325   : > { %3889 = vperm.xlu0 %4251, %v3748_v50   ;;  %v1689_v8 = vrot.slane %v1157_v34, %v5142_v37  ;;  %v3752_v49 = vcombine.low %v2225_v62, %v2229_v59  ;;  %v3759_v3 = vrot.slane %v3749_v60, %v5170_v35  ;;  %v1693_v56 = vrot.slane %v1157_v34, %v5145_v20 }
 0x326   : > { %v2963_v29 = vrot.slane %v2949_v42, %v5170_v35  ;;  %v3766_v58 = vrot.slane %v3750_v30, %v5170_v35  ;;  %v3773_v40 = vrot.slane %v3751_v57, %v5170_v35  ;;  %v1697_v43 = vrot.slane %v1157_v34, %v5149_v52  ;;  %v6305_v42 = vld [vmem:[#allocation15_spill] sm:$0xff] }
 0x327   : > { %v3780_v61 = vrot.slane %v3752_v49, %v5170_v35  ;;  %v1701_v51 = vrot.slane %v1157_v34, %v5152_v23  ;;  %v1705_v12 = vrot.slane %v1157_v34, %v6297_v14  ;;  %v1709_v37 = vrot.slane %v1157_v34, %v6298_v0  ;;  %v6090_v41 = vpop.permute.xlu0 %3814 }
 0x328   : > { %v2964_v54 = vcombine.low %v2956_v32, %v2963_v29  ;;  %v3781_v44 = vcombine.low %v3759_v3, %v3766_v58  ;;  %v1713_v33 = vrot.slane %v1157_v34, %v6299_v9  ;;  %v1717_v20 = vrot.slane %v1157_v34, %v6300_v17  ;;  %v6094_v26 = vpop.permute.xlu1 %3811 }
 0x329   : > { %v2965_v36 = vcombine.low %v1689_v8, %v1693_v56  ;;  %v3782_v2 = vcombine.low %v3773_v40, %v3780_v61  ;;  %v2966_v27 = vcombine.low %v1697_v43, %v1701_v51  ;;  %v2967_v4 = vcombine.low %v1705_v12, %v1709_v37 }
 0x32a   : > { %3841 = vperm.xlu1 %4252, %v2964_v54   ;;  %v3789_v52 = vrot.slane %v3781_v44, %v5170_v35  ;;  %v2968_v11 = vcombine.low %v1713_v33, %v1717_v20  ;;  %v3898_v32 = vadd.s32 4294967288, %v6305_v42  ;;  %v3905_v13 = vadd.s32 4294967280, %v6305_v42 }
 0x32b   : > { %v2975_v23 = vrot.slane %v2965_v36, %v5170_v35  ;;  %v3796_v14 = vrot.slane %v3782_v2, %v5170_v35  ;;  %v2982_v0 = vrot.slane %v2966_v27, %v5170_v35  ;;  %v2989_v5 = vrot.slane %v2967_v4, %v5170_v35 }
 0x32c   : > { %v2996_v9 = vrot.slane %v2968_v11, %v5170_v35  ;;  %v3896_v62 = vsub.s32 %v6305_v42, %v6306_v1  ;;  %v3912_v59 = vadd.s32 4294967272, %v6305_v42  ;;  %v3901_v60 = vsub.s32 %v3898_v32, %v6306_v1 }
 0x32d   : > { %v3797_v39 = vcombine.low %v3789_v52, %v3796_v14  ;;  %v2997_v17 = vcombine.low %v2975_v23, %v2982_v0  ;;  %v3908_v30 = vsub.s32 %v3905_v13, %v6306_v1  ;;  %v3926_v3 = vadd.s32 4294967256, %v6305_v42 }
 0x32e   : > { %v2998_v6 = vcombine.low %v2989_v5, %v2996_v9  ;;  %v3897_v8 = vrot.slane %v3800_v25, %v3896_v62  ;;  %v3915_v49 = vsub.s32 %v3912_v59, %v6306_v1  ;;  %v3902_v54 = vrot.slane %v3803_v48, %v3901_v60 }
 0x32f   : > { %3892 = vperm.xlu0 %4251, %v3797_v39   ;;  %v3005_v47 = vrot.slane %v2997_v17, %v5170_v35  ;;  %v3919_v58 = vadd.s32 4294967264, %v6305_v42  ;;  %v3909_v40 = vrot.slane %v3806_v31, %v3908_v30  ;;  %v3929_v44 = vsub.s32 %v3926_v3, %v6306_v1 }
 0x330   : > { %v3012_v63 = vrot.slane %v2998_v6, %v5170_v35  ;;  %v3904_v61 = vsel %vm3903_vm0, %v3902_v54, %v3897_v8  ;;  %v3916_v51 = vrot.slane %v3809_v46, %v3915_v49  ;;  %v3933_v27 = vadd.s32 4294967248, %v6305_v42 }
 0x331   : > { %v6098_v28 = vpop.permute.xlu1 %3817  ;;  %v3922_v2 = vsub.s32 %v3919_v58, %v6306_v1  ;;  %v3911_v4 = vsel %vm3910_vm3, %v3909_v40, %v3904_v61  ;;  %v3940_v52 = vadd.s32 4294967240, %v6305_v42  ;;  %v3930_v0 = vrot.slane %v6090_v41, %v3929_v44 }
 0x332   : > { %v3013_v7 = vcombine.low %v3005_v47, %v3012_v63  ;;  %v3918_v11 = vsel %vm3917_vm4, %v3916_v51, %v3911_v4  ;;  %v3936_v17 = vsub.s32 %v3933_v27, %v6306_v1  ;;  %v3947_v6 = vadd.s32 4294967232, %v6305_v42 }
 0x333   : > { %v3923_v39 = vrot.slane %v6094_v26, %v3922_v2  ;;  %v3943_v63 = vsub.s32 %v3940_v52, %v6306_v1  ;;  %v3982_v32 = vadd.s32 4294967192, %v6305_v42 }
 0x334   : > { %3844 = vperm.xlu1 %4252, %v3013_v7   ;;  %v3954_v7 = vadd.s32 4294967224, %v6305_v42  ;;  %v3937_v3 = vrot.slane %v6098_v28, %v3936_v17 }
 0x335   : > { %v3925_v46 = vsel %vm3924_vm5, %v3923_v39, %v3918_v11  ;;  %v3985_v58 = vsub.s32 %v3982_v32, %v6306_v1 }
 0x336   : > { %v3932_v31 = vsel %vm3931_vm6, %v3930_v0, %v3925_v46 }
 0x33d   : > { %v6092_v24 = vpop.permute.xlu0 %3820 }
 0x343   : > { %v6100_v45 = vpop.permute.xlu1 %3823 }
 0x348   : > { %v6096_v55 = vpop.permute.xlu0 %3826 }
 0x34d   : > { %v3848_v18 = vpop.permute.xlu0 %3847 }
 0x34e   : > { %v4006_v43 = vrot.slane %v3848_v18, %v3896_v62  ;;  %v3989_v62 = vadd.s32 4294967184, %v6305_v42 }
 0x352   : > { %v6102_v34 = vpop.permute.xlu1 %3829 }
 0x356   : > { %v3851_v10 = vpop.permute.xlu1 %3850 }
 0x357   : > { %v4010_v56 = vrot.slane %v3851_v10, %v3901_v60  ;;  %v3950_v10 = vsub.s32 %v3947_v6, %v6306_v1 }
 0x358   : > { %v3854_v21 = vpop.permute.xlu0 %3853 }
 0x359   : > { %v4015_v12 = vrot.slane %v3854_v21, %v3908_v30  ;;  %v4011_v33 = vsel %vm3903_vm0, %v4010_v56, %v4006_v43  ;;  %v3968_v21 = vadd.s32 4294967208, %v6305_v42 }
 0x35a   : > { %v3857_v16 = vpop.permute.xlu1 %3856 }
 0x35b   : > { %v4020_v20 = vrot.slane %v3857_v16, %v3915_v49  ;;  %v4016_v23 = vsel %vm3910_vm3, %v4015_v12, %v4011_v33  ;;  %v3975_v16 = vadd.s32 4294967200, %v6305_v42  ;;  %v3971_v30 = vsub.s32 %v3968_v21, %v6306_v1 }
 0x35c   : > { %v3996_v49 = vadd.s32 4294967176, %v6305_v42  ;;  %v3939_v12 = vsel %vm3938_vm7, %v3937_v3, %v3932_v31 }
 0x35d   : > { %v4021_v5 = vsel %vm3917_vm4, %v4020_v20, %v4016_v23  ;;  %v3978_v54 = vsub.s32 %v3975_v16, %v6306_v1 }
 0x35e   : > { %v3860_v15 = vpop.permute.xlu0 %3859  ;;  %v3863_v38 = vpop.permute.xlu1 %3862 }
 0x35f   : > { %v4025_v14 = vrot.slane %v3860_v15, %v3922_v2  ;;  %v4030_v9 = vrot.slane %v3863_v38, %v3929_v44  ;;  %v3961_v15 = vadd.s32 4294967216, %v6305_v42  ;;  %v3957_v38 = vsub.s32 %v3954_v7, %v6306_v1 }
 0x360   : > { %v3992_v42 = vsub.s32 %v3989_v62, %v6306_v1 }
 0x361   : > { %v4026_v48 = vsel %vm3924_vm5, %v4025_v14, %v4021_v5  ;;  %v3964_v56 = vsub.s32 %v3961_v15, %v6306_v1  ;;  %v3958_v28 = vrot.slane %v6096_v55, %v3957_v38 }
 0x362   : > { %v4031_v18 = vsel %vm3931_vm6, %v4030_v9, %v4026_v48 }
 0x363   : > { %v6104_v19 = vpop.permute.xlu0 %3865  ;;  %v3965_v44 = vrot.slane %v6102_v34, %v3964_v56 }
 0x364   : > { %v4035_v41 = vrot.slane %v6104_v19, %v3936_v17 }
 0x366   : > { %v4036_v19 = vsel %vm3938_vm7, %v4035_v41, %v4031_v18  ;;  %v6307_v41 = vlaneseq }
 0x368   : > { %v6106_v50 = vpop.permute.xlu0 %3871  ;;  %vm4100_vm2 = vcmp.lt.s32.totalorder %v6307_v41, 256 }
 0x36e   : > { %v6108_v53 = vpop.permute.xlu1 %3868 }
 0x36f   : > { %v4040_v26 = vrot.slane %v6108_v53, %v3943_v63  ;;  %v4045_v53 = vrot.slane %v6106_v50, %v3950_v10  ;;  %v3944_v50 = vrot.slane %v6092_v24, %v3943_v63  ;;  %v3999_v24 = vsub.s32 %v3996_v49, %v6306_v1 }
 0x371   : > { %v4041_v59 = vsel %vm3945_vm8, %v4040_v26, %v4036_v19 }
 0x372   : > { %v4046_v40 = vsel %vm3952_vm9, %v4045_v53, %v4041_v59 }
 0x373   : > { %v6110_v22 = vpop.permute.xlu0 %3877 }
 0x374   : > { %v4055_v43 = vrot.slane %v6110_v22, %v3964_v56  ;;  %v3946_v22 = vsel %vm3945_vm8, %v3944_v50, %v3939_v12 }
 0x378   : > { %v6118_v29 = vpop.permute.xlu1 %3874 }
 0x379   : > { %v4050_v60 = vrot.slane %v6118_v29, %v3957_v38  ;;  %v3951_v29 = vrot.slane %v6100_v45, %v3950_v10 }
 0x37b   : > { %v4051_v61 = vsel %vm3959_vm10, %v4050_v60, %v4046_v40 }
 0x37c   : > { %v4056_v1 = vsel %vm3966_vm11, %v4055_v43, %v4051_v61 }
 0x37e   : > { %v6121_v57 = vpop.permute.xlu0 %3880 }
 0x37f   : > { %v4060_v51 = vrot.slane %v6121_v57, %v3971_v30  ;;  %v3953_v57 = vsel %vm3952_vm9, %v3951_v29, %v3946_v22 }
 0x380   : > { %v3960_v34 = vsel %vm3959_vm10, %v3958_v28, %v3953_v57 }
 0x383   : > { %v6126_v37 = vpop.permute.xlu1 %3832 }
 0x384   : > { %v3972_v20 = vrot.slane %v6126_v37, %v3971_v30  ;;  %v3967_v37 = vsel %vm3966_vm11, %v3965_v44, %v3960_v34 }
 0x386   : > { %v3974_v0 = vsel %vm3973_vm12, %v3972_v20, %v3967_v37 }
 0x388   : > { %v6129_v36 = vpop.permute.xlu0 %3883 }
 0x389   : > { %v4065_v45 = vrot.slane %v6129_v36, %v3978_v54  ;;  %v4061_v36 = vsel %vm3973_vm12, %v4060_v51, %v4056_v1 }
 0x38b   : > { %v4066_v23 = vsel %vm3980_vm13, %v4065_v45, %v4061_v36 }
 0x38d   : > { %v6138_v47 = vpop.permute.xlu1 %3835 }
 0x38e   : > { %v3979_v27 = vrot.slane %v6138_v47, %v3978_v54 }
 0x390   : > { %v3981_v9 = vsel %vm3980_vm13, %v3979_v27, %v3974_v0 }
 0x394   : > { %v6142_v25 = vpop.permute.xlu0 %3886 }
 0x395   : > { %v4070_v55 = vrot.slane %v6142_v25, %v3985_v58 }
 0x397   : > { %v4071_v5 = vsel %vm3987_vm14, %v4070_v55, %v4066_v23 }
 0x399   : > { %v3839_v13 = vpop.permute.xlu1 %3838 }
 0x39a   : > { %v3986_v52 = vrot.slane %v3839_v13, %v3985_v58 }
 0x39c   : > { %v3988_v6 = vsel %vm3987_vm14, %v3986_v52, %v3981_v9 }
 0x3a0   : > { %v3890_v8 = vpop.permute.xlu0 %3889 }
 0x3a1   : > { %v4075_v4 = vrot.slane %v3890_v8, %v3992_v42 }
 0x3a3   : > { %v4076_v39 = vsel %vm3994_vm15, %v4075_v4, %v4071_v5 }
 0x3a5   : > { %v3842_v33 = vpop.permute.xlu1 %3841 }
 0x3a6   : > { %v3993_v14 = vrot.slane %v3842_v33, %v3992_v42 }
 0x3a8   : > { %v3995_v7 = vsel %vm3994_vm15, %v3993_v14, %v3988_v6 }
 0x3aa   : > { %v3893_v2 = vpop.permute.xlu0 %3892 }
 0x3ab   : > { %v4080_v11 = vrot.slane %v3893_v2, %v3999_v24 }
 0x3ad   : > { %v4081_v63 = vsel %vm4001_vm1, %v4080_v11, %v4076_v39 }
 0x3af   : > { %v3845_v17 = vpop.permute.xlu1 %3844 }
 0x3b0   : > { %v4000_v47 = vrot.slane %v3845_v17, %v3999_v24 }
 0x3b2   : > { %v4002_v25 = vsel %vm4001_vm1, %v4000_v47, %v3995_v7 }
 0x3b3   : > { %v4082_v46 = vcombine.low %v4002_v25, %v4081_v63 }
 0x3b5   : > { %v4089_v48 = vrot.slane %v4082_v46, %v5170_v35  ;;  %4110 = sbr.rel (!%p4563_p5) target bundleno = 980 (0x3d4), region = 32 }
 0x3b7   : > { %v4096_v31 = vrot.slane %v4089_v48, %v5170_v35 }
 0x3b9   : > { %4102 = vst.msk [vmem:[%s177_s4] sm:$0x3] %vm4100_vm2, %v4096_v31 }
 0x3ba   : > { %s6313_s7 = smov (!%p4113_p11, %s4112_s7), 2 }
 0x3bb   : > { %s6203_s8 = sshll.u32 %s6313_s7, 4 }
 0x3bc   : > { %s4117_s14 = ssub.s32 32, %s6203_s8 }
 0x3bd   : > { %4118 = vsyncadd %s6198_s5, %s4117_s14  ;;  %p4206_p12 = scmp.ne.s32.totalorder %s6203_s8, 0  ;;  %s4121_s19 = scalar_lea.hbm %s6247_s2, %s4574_s21 }
 0x3be   : > { %s4123_s22 = sshll.u32 %s177_s4, 4  ;;  %s4509_s23 = smov [#allocation2]   ;;  %s4124_s22 = int_to_ptr.vmem [resolvable:$true] %s4123_s22 }
 0x3bf   : > { %s4445_s13 = scalar_lea.vmem %s4124_s22, %s6203_s8  ;;  %s4449_s24 = sshll.u32 %s4509_s23, 4  ;;  %s4450_s24 = int_to_ptr.vmem [resolvable:$false] %s4449_s24 }
 0x3c0   : > { %p4446_p13 = scmp.ne.s32.totalorder %s4124_s22, %s4445_s13  ;;  %s4451_s25 = scalar_lea.vmem %s4450_s24, 64 }
 0x3c1   : > { %p4452_p2 = scmp.lt.s32.totalorder %s4124_s22, %s4450_s24  ;;  %p4453_p3 = scmp.lt.s32.totalorder %s4451_s25, %s4445_s13 }
 0x3c2   : > { %p4447_p0 = pnand %p4446_p13, %p4206_p12 }
 0x3c3   : > { %p4454_p4 = por %p4453_p3, %p4452_p2 }
 0x3c4   : > { %p4448_p1 = pneg %p4447_p0 }
 0x3c6   : > { %p4455_p5 = pnand %p4454_p4, %p4448_p1 }
 0x3c8   : > { %4458 = shalt.err (!%p4455_p5)
}
 0x3c9   : > { %s4459_s26 = scalar_lea.hbm %s4121_s19, %s6203_s8  ;;  %s4463_s28 = scalar_lea.hbm %s6247_s2, 48 }
 0x3ca   : > { %p4460_p7 = scmp.ne.s32.totalorder %s4121_s19, %s4459_s26  ;;  %p4464_p10 = scmp.lt.s32.totalorder %s4121_s19, %s6247_s2 }
 0x3cb   : > { %p4465_p11 = scmp.lt.s32.totalorder %s4463_s28, %s4459_s26 }
 0x3cc   : > { %p4461_p8 = pnand %p4460_p7, %p4206_p12 }
 0x3cd   : > { %p4466_p13 = por %p4465_p11, %p4464_p10 }
 0x3ce   : > { %p4462_p9 = pneg %p4461_p8 }
 0x3d0   : > { %p4467_p0 = pnand %p4466_p13, %p4462_p9 }
 0x3d2   : > { %4470 = shalt.err (!%p4467_p0)
}
 0x3d3   : > { %4126 = dma.vmem_to_hbm [thread:$0]  (%p4206_p12), %s4124_s22, %s6203_s8, %s4121_s19, %s6198_s5  }
 0x3d4 PF: > { %p4216_p1 = scmp.ge.s32.totalorder %s4505_s12, 2  ;;  %s4135_s3 = sand.u32 1, %s4493_s9  }
 0x3d5   : > { %s4136_s4 = scalar_lea.sflag [#allocation3], %s4135_s3 }
 0x3d6   : > { %p4213_p2 = pnand %p4216_p1, %p4567_p6 }
 0x3d8   : > { %p4214_p3 = pneg %p4213_p2 }
 0x3da   : > { %4488 = dma.done.wait (%p4214_p3), %s4136_s4, 32  }
 0x3db   : > { %4490 = vsyncadd (%p4214_p3), %s4136_s4, 4294967264  ;;  %p12_p4 = scmp.ge.s32.totalorder %s4550_s15, 4   ;;  %s6308_s9 = smov %s4497_s10 }
 0x3dc   : > { %s6309_s10 = smov %s4501_s11  ;;  %s6310_s11 = smov %s4561_s18 }
 0x3dd   : > { %s6311_s12 = smov %s4550_s15  ;;  %14 = sbr.rel (!%p12_p4) target bundleno = 3 (0x3), region = 66 }
 0x3e2   :  { %4141 = vsyncpa [#allocation3], 1 }
 0x3e3   :  { %4143 = vsyncpa [#allocation3 + $0x1], 1 }

</bundles_post_ra>
